<compile_context>
chip_gen: v5e
topology: v5e:2x2
jax: 0.10.0
libtpu: 0.0.40
codegen_flags: <defaults>
</compile_context>

<pallas_src>
import jax
import jax.numpy as jnp
from jax.experimental import pallas as pl
from jax.experimental.pallas import tpu as pltpu

N_BLOCKS = 10
BN_EPS = 1e-5


# ----------------------------- shared math -----------------------------------

def _bn_relu_fold(x, gamma, beta, inv_b):
    """Training-mode BatchNorm1d + affine + ReLU, all in f32.

    One fused batch reduction: sum([x | x*x]) over the batch (sublane) axis —
    feature width 64 + 64 fills exactly one 128-lane vreg — then 1/B is folded
    into the scale math.  var = E[x^2] - E[x]^2 (single pass, eps-guarded).
    """
    f = x.shape[1]
    s = jnp.sum(jnp.concatenate([x, x * x], axis=1), axis=0, keepdims=True)
    mean = s[:, :f] * inv_b
    var = s[:, f:] * inv_b - mean * mean
    scale = gamma * jax.lax.rsqrt(var + BN_EPS)      # rsqrt -> EUP slot
    shift = beta - mean * scale
    return jnp.maximum(x * scale + shift, 0.0)


# ------------------------------- kernel ---------------------------------------

def qvalue_kernel(xin_ref, win_ref, vin_ref, wres_ref, vres_ref, wout_ref, q_ref):
    inv_b = 1.0 / xin_ref.shape[0]                   # static

    # Input layer (fc bias dropped: dead under training-mode BN).
    x = jnp.dot(xin_ref[...].astype(jnp.bfloat16), win_ref[...],
                preferred_element_type=jnp.float32)
    x = _bn_relu_fold(x, vin_ref[0:1], vin_ref[1:2], inv_b)

    # 10 ResidualBlocks: x = x + relu(bn(fc(x))).  Static unroll keeps full LLO
    # visibility; per-iteration ref indexing keeps only one block's weights
    # live in vregs at a time (no spills).
    for i in range(N_BLOCKS):
        h = jnp.dot(x.astype(jnp.bfloat16), wres_ref[i],
                    preferred_element_type=jnp.float32)
        v = vres_ref[i]                              # (2, 2H): gamma, beta
        x = x + _bn_relu_fold(h, v[0:1], v[1:2], inv_b)

    # Twin scalar heads fused into one (2H, 2) matmul; bias lives in vec_in row 2.
    b_out = vin_ref[2:3][:, 0:2]
    q_ref[...] = (jnp.dot(x.astype(jnp.bfloat16), wout_ref[...],
                          preferred_element_type=jnp.float32) + b_out)


def qvalue_net(state, action, packed):
    """Pallas wrapper. state: (B, state_dim), action: (B, action_dim)."""
    B = state.shape[0]
    x_in = jnp.concatenate([state, action], axis=1).astype(jnp.float32)
    args = (x_in,) + tuple(packed)
    vmem = pl.BlockSpec(memory_space=pltpu.MemorySpace.VMEM)
    q = pl.pallas_call(
        qvalue_kernel,
        out_shape=jax.ShapeDtypeStruct((B, 2), jnp.float32),
        in_specs=[vmem] * len(args),
        out_specs=vmem,
    )(*args)
    return q[:, 0:1], q[:, 1:2]


# ----------------------------- parameter setup --------------------------------

def _uniform(key, shape, bound):
    return jax.random.uniform(key, shape, jnp.float32, minval=-bound, maxval=bound)


def _make_branch_params(key, d_in, hidden):
    """f32 master parameters for one Q branch (PyTorch-default-style init)."""
    ks = jax.random.split(key, 6)
    b_in = 1.0 / jnp.sqrt(d_in)
    b_h = 1.0 / jnp.sqrt(hidden)
    w_in = _uniform(ks[0], (d_in, hidden), b_in)           # fc1.weight^T
    bi = _uniform(ks[1], (1, hidden), b_in)                 # fc1.bias (dead under BN)
    g = jnp.ones((1, hidden), jnp.float32)                  # bn1.weight
    be = jnp.zeros((1, hidden), jnp.float32)                # bn1.bias
    w_res = _uniform(ks[2], (N_BLOCKS, hidden, hidden), b_h)
    b_res = _uniform(ks[3], (N_BLOCKS, 1, hidden), b_h)     # fc.bias (dead under BN)
    g_res = jnp.ones((N_BLOCKS, 1, hidden), jnp.float32)
    be_res = jnp.zeros((N_BLOCKS, 1, hidden), jnp.float32)
    w_out = _uniform(ks[4], (hidden, 1), b_h)               # fc_out.weight^T
    b_out = _uniform(ks[5], (1, 1), b_h)                    # fc_out.bias
    return (w_in, bi, g, be, w_res, b_res, g_res, be_res, w_out, b_out)


def init_params(key, state_dim, hidden_dim, action_dim):
    k1, k2 = jax.random.split(key)
    d_in = state_dim + action_dim
    return _make_branch_params(k1, d_in, hidden_dim) + _make_branch_params(k2, d_in, hidden_dim)


def pack_params(raw, hidden):
    """Fuse both branches feature-wise into 5 packed arrays (bf16 weights)."""
    (w1, _b1, g1, be1, wr1, _br1, gr1, ber1, wo1, bo1,
     w2, _b2, g2, be2, wr2, _br2, gr2, ber2, wo2, bo2) = raw
    H = hidden

    w_in = jnp.concatenate([w1, w2], axis=1)                        # (d_in, 2H)

    bout_row = jnp.zeros((1, 2 * H), jnp.float32)
    bout_row = bout_row.at[0, 0].set(bo1[0, 0]).at[0, 1].set(bo2[0, 0])
    vec_in = jnp.concatenate([
        jnp.concatenate([g1, g2], axis=1),                          # gamma
        jnp.concatenate([be1, be2], axis=1),                        # beta
        bout_row], axis=0)                                          # (3, 2H)

    zeros = jnp.zeros((N_BLOCKS, H, H), jnp.float32)
    w_res = jnp.concatenate([
        jnp.concatenate([wr1, zeros], axis=2),
        jnp.concatenate([zeros, wr2], axis=2)], axis=1)             # (N, 2H, 2H)

    def cat2(a, b):
        return jnp.concatenate([a[:, 0, :], b[:, 0, :]], axis=1)    # (N, 2H)
    vec_res = jnp.stack([cat2(gr1, gr2), cat2(ber1, ber2)], axis=1)  # (N, 2, 2H)

    zcol = jnp.zeros((H, 1), jnp.float32)
    w_out = jnp.concatenate([
        jnp.concatenate([wo1, zcol], axis=1),
        jnp.concatenate([zcol, wo2], axis=1)], axis=0)              # (2H, 2)

    return (w_in.astype(jnp.bfloat16), vec_in,
            w_res.astype(jnp.bfloat16), vec_res,
            w_out.astype(jnp.bfloat16))


# ------------------------------- references -----------------------------------

def _batchnorm_train(x, gamma, beta):
    mean = jnp.mean(x, axis=0, keepdims=True)
    var = jnp.mean((x - mean) ** 2, axis=0, keepdims=True)
    return gamma * (x - mean) * jax.lax.rsqrt(var + BN_EPS) + beta


def qvalue_net_ref_f32(state, action, raw):
    """Pure-JAX f32 reference, faithful to the PyTorch module (with biases)."""
    cat = jnp.concatenate([state, action], axis=1).astype(jnp.float32)
    (w1, b1, g1, be1, wr1, br1, gr1, ber1, wo1, bo1,
     w2, b2, g2, be2, wr2, br2, gr2, ber2, wo2, bo2) = raw

    def branch(w_in, b_in, g_in, be_in, wr, br, gr, ber, wo, bo):
        x = jnp.maximum(_batchnorm_train(cat @ w_in + b_in, g_in, be_in), 0.0)
        for i in range(N_BLOCKS):
            # ResidualBlock.forward: out = relu(bn(fc(x))); out += residual
            h = jnp.maximum(_batchnorm_train(x @ wr[i] + br[i], gr[i], ber[i]), 0.0)
            x = h + x
        return x @ wo + bo

    return (branch(w1, b1, g1, be1, wr1, br1, gr1, ber1, wo1, bo1),
            branch(w2, b2, g2, be2, wr2, br2, gr2, ber2, wo2, bo2))


def qvalue_net_ref_bf16(state, action, packed):
    """Plain-JAX run of the exact same math path as the kernel."""
    w_in, vec_in, w_res, vec_res, w_out = packed
    inv_b = 1.0 / state.shape[0]
    x_in = jnp.concatenate([state, action], axis=1).astype(jnp.float32)
    x = jnp.dot(x_in.astype(jnp.bfloat16), w_in, preferred_element_type=jnp.float32)
    x = _bn_relu_fold(x, vec_in[0:1], vec_in[1:2], inv_b)
    for i in range(N_BLOCKS):
        h = jnp.dot(x.astype(jnp.bfloat16), w_res[i], preferred_element_type=jnp.float32)
        x = x + _bn_relu_fold(h, vec_res[i, 0:1], vec_res[i, 1:2], inv_b)
    q = (jnp.dot(x.astype(jnp.bfloat16), w_out, preferred_element_type=jnp.float32)
         + vec_in[2:3, 0:2])
    return q[:, 0:1], q[:, 1:2]


# --------------------------------- main ----------------------------------------

if __name__ == "__main__":
    STATE_DIM, ACTION_DIM, HIDDEN_DIM, BATCH = 24, 8, 32, 8

    key = jax.random.PRNGKey(0)
    k_state, k_action, k_params = jax.random.split(key, 3)
    state = jax.random.normal(k_state, (BATCH, STATE_DIM), jnp.float32)
    action = jax.random.normal(k_action, (BATCH, ACTION_DIM), jnp.float32)

    raw = init_params(k_params, STATE_DIM, HIDDEN_DIM, ACTION_DIM)
    packed = pack_params(raw, HIDDEN_DIM)

    q1, q2 = qvalue_net(state, action, packed)
    jax.block_until_ready((q1, q2))
    assert q1.shape == (BATCH, 1) and q2.shape == (BATCH, 1)

    # (1) Tight check vs. a plain-JAX run of the identical bf16/f32 math path.
    q1_b, q2_b = qvalue_net_ref_bf16(state, action, packed)
    assert jnp.allclose(q1, q1_b, rtol=2e-2, atol=2e-2)
    assert jnp.allclose(q2, q2_b, rtol=2e-2, atol=2e-2)

    # (2) Semantic check vs. the f32 two-branch PyTorch-style reference
    #     (loose tolerance: bf16 MXU inputs drift slightly over 12 serial
    #     matmuls; the dropped pre-BN biases cancel exactly in the BN mean).
    q1_f, q2_f = qvalue_net_ref_f32(state, action, raw)
    assert jnp.allclose(q1, q1_f, rtol=1.5e-1, atol=1.5e-1)
    assert jnp.allclose(q2, q2_f, rtol=1.5e-1, atol=1.5e-1)

    print("KERNEL_OK")
</pallas_src>

<mosaic_0001>
module attributes {stable_mosaic.version = 11 : i64} {
  func.func @qvalue_kernel(%arg0: memref<8x32xf32, #tpu.memory_space<vmem>>, %arg1: memref<32x64xbf16, #tpu.memory_space<vmem>>, %arg2: memref<3x64xf32, #tpu.memory_space<vmem>>, %arg3: memref<10x64x64xbf16, #tpu.memory_space<vmem>>, %arg4: memref<10x2x64xf32, #tpu.memory_space<vmem>>, %arg5: memref<64x2xbf16, #tpu.memory_space<vmem>>, %arg6: memref<8x2xf32, #tpu.memory_space<vmem>>) attributes {dimension_semantics = [], scalar_prefetch = 0 : i64, scratch_operands = 0 : i64, tpu.core_type = #tpu.core_type<tc>} {
    %c0 = arith.constant 0 : index
    %c0_0 = arith.constant 0 : index
    %0 = vector.load %arg0[%c0, %c0_0] : memref<8x32xf32, #tpu.memory_space<vmem>>, vector<8x32xf32>
    %1 = arith.truncf %0 : vector<8x32xf32> to vector<8x32xbf16>
    %c0_1 = arith.constant 0 : index
    %c0_2 = arith.constant 0 : index
    %2 = vector.load %arg1[%c0_1, %c0_2] : memref<32x64xbf16, #tpu.memory_space<vmem>>, vector<32x64xbf16>
    %cst = arith.constant dense<0.000000e+00> : vector<8x64xf32>
    %3 = tpu.matmul %1, %2, %cst {dimension_numbers = #tpu.dot_dimension_numbers<[1], [0], [0], [1], [0, 0, 1, 1], [], []>} : vector<8x32xbf16>, vector<32x64xbf16>, vector<8x64xf32> -> vector<8x64xf32>
    %c0_3 = arith.constant 0 : index
    %c0_4 = arith.constant 0 : index
    %4 = vector.load %arg2[%c0_3, %c0_4] : memref<3x64xf32, #tpu.memory_space<vmem>>, vector<1x64xf32>
    %c1 = arith.constant 1 : index
    %c0_5 = arith.constant 0 : index
    %5 = vector.load %arg2[%c1, %c0_5] : memref<3x64xf32, #tpu.memory_space<vmem>>, vector<1x64xf32>
    %6 = arith.mulf %3, %3 : vector<8x64xf32>
    %7 = tpu.concatenate %3, %6 in 1 : vector<8x64xf32>, vector<8x64xf32> -> vector<8x128xf32>
    %cst_6 = arith.constant dense<0.000000e+00> : vector<128xf32>
    %8 = vector.multi_reduction <add>, %7, %cst_6 [0] : vector<8x128xf32> to vector<128xf32>
    %9 = vector.shape_cast %8 : vector<128xf32> to vector<1x128xf32>
    %10 = vector.extract_strided_slice %9 {offsets = [0, 0], sizes = [1, 64], strides = [1, 1]} : vector<1x128xf32> to vector<1x64xf32>
    %cst_7 = arith.constant 1.250000e-01 : f32
    %11 = vector.broadcast %cst_7 : f32 to vector<1x64xf32>
    %12 = arith.mulf %10, %11 : vector<1x64xf32>
    %13 = vector.extract_strided_slice %9 {offsets = [0, 64], sizes = [1, 64], strides = [1, 1]} : vector<1x128xf32> to vector<1x64xf32>
    %cst_8 = arith.constant 1.250000e-01 : f32
    %14 = vector.broadcast %cst_8 : f32 to vector<1x64xf32>
    %15 = arith.mulf %13, %14 : vector<1x64xf32>
    %16 = arith.mulf %12, %12 : vector<1x64xf32>
    %17 = arith.subf %15, %16 : vector<1x64xf32>
    %cst_9 = arith.constant 9.99999974E-6 : f32
    %18 = vector.broadcast %cst_9 : f32 to vector<1x64xf32>
    %19 = arith.addf %17, %18 : vector<1x64xf32>
    %20 = math.rsqrt %19 : vector<1x64xf32>
    %21 = arith.mulf %4, %20 : vector<1x64xf32>
    %22 = arith.mulf %12, %21 : vector<1x64xf32>
    %23 = arith.subf %5, %22 : vector<1x64xf32>
    %24 = vector.broadcast %21 : vector<1x64xf32> to vector<8x64xf32>
    %25 = arith.mulf %3, %24 : vector<8x64xf32>
    %26 = vector.broadcast %23 : vector<1x64xf32> to vector<8x64xf32>
    %27 = arith.addf %25, %26 : vector<8x64xf32>
    %cst_10 = arith.constant 0.000000e+00 : f32
    %28 = vector.broadcast %cst_10 : f32 to vector<8x64xf32>
    %29 = arith.maximumf %27, %28 : vector<8x64xf32>
    %30 = arith.truncf %29 : vector<8x64xf32> to vector<8x64xbf16>
    %c0_11 = arith.constant 0 : index
    %c0_12 = arith.constant 0 : index
    %c0_13 = arith.constant 0 : index
    %31 = vector.load %arg3[%c0_11, %c0_12, %c0_13] : memref<10x64x64xbf16, #tpu.memory_space<vmem>>, vector<1x64x64xbf16>
    %32 = vector.shape_cast %31 : vector<1x64x64xbf16> to vector<64x64xbf16>
    %cst_14 = arith.constant dense<0.000000e+00> : vector<8x64xf32>
    %33 = tpu.matmul %30, %32, %cst_14 {dimension_numbers = #tpu.dot_dimension_numbers<[1], [0], [0], [1], [0, 0, 1, 1], [], []>} : vector<8x64xbf16>, vector<64x64xbf16>, vector<8x64xf32> -> vector<8x64xf32>
    %c0_15 = arith.constant 0 : index
    %c0_16 = arith.constant 0 : index
    %c0_17 = arith.constant 0 : index
    %34 = vector.load %arg4[%c0_15, %c0_16, %c0_17] : memref<10x2x64xf32, #tpu.memory_space<vmem>>, vector<1x2x64xf32>
    %35 = vector.shape_cast %34 : vector<1x2x64xf32> to vector<2x64xf32>
    %36 = vector.extract_strided_slice %35 {offsets = [0, 0], sizes = [1, 64], strides = [1, 1]} : vector<2x64xf32> to vector<1x64xf32>
    %37 = vector.extract_strided_slice %35 {offsets = [1, 0], sizes = [1, 64], strides = [1, 1]} : vector<2x64xf32> to vector<1x64xf32>
    %38 = arith.mulf %33, %33 : vector<8x64xf32>
    %39 = tpu.concatenate %33, %38 in 1 : vector<8x64xf32>, vector<8x64xf32> -> vector<8x128xf32>
    %cst_18 = arith.constant dense<0.000000e+00> : vector<128xf32>
    %40 = vector.multi_reduction <add>, %39, %cst_18 [0] : vector<8x128xf32> to vector<128xf32>
    %41 = vector.shape_cast %40 : vector<128xf32> to vector<1x128xf32>
    %42 = vector.extract_strided_slice %41 {offsets = [0, 0], sizes = [1, 64], strides = [1, 1]} : vector<1x128xf32> to vector<1x64xf32>
    %cst_19 = arith.constant 1.250000e-01 : f32
    %43 = vector.broadcast %cst_19 : f32 to vector<1x64xf32>
    %44 = arith.mulf %42, %43 : vector<1x64xf32>
    %45 = vector.extract_strided_slice %41 {offsets = [0, 64], sizes = [1, 64], strides = [1, 1]} : vector<1x128xf32> to vector<1x64xf32>
    %cst_20 = arith.constant 1.250000e-01 : f32
    %46 = vector.broadcast %cst_20 : f32 to vector<1x64xf32>
    %47 = arith.mulf %45, %46 : vector<1x64xf32>
    %48 = arith.mulf %44, %44 : vector<1x64xf32>
    %49 = arith.subf %47, %48 : vector<1x64xf32>
    %cst_21 = arith.constant 9.99999974E-6 : f32
    %50 = vector.broadcast %cst_21 : f32 to vector<1x64xf32>
    %51 = arith.addf %49, %50 : vector<1x64xf32>
    %52 = math.rsqrt %51 : vector<1x64xf32>
    %53 = arith.mulf %36, %52 : vector<1x64xf32>
    %54 = arith.mulf %44, %53 : vector<1x64xf32>
    %55 = arith.subf %37, %54 : vector<1x64xf32>
    %56 = vector.broadcast %53 : vector<1x64xf32> to vector<8x64xf32>
    %57 = arith.mulf %33, %56 : vector<8x64xf32>
    %58 = vector.broadcast %55 : vector<1x64xf32> to vector<8x64xf32>
    %59 = arith.addf %57, %58 : vector<8x64xf32>
    %cst_22 = arith.constant 0.000000e+00 : f32
    %60 = vector.broadcast %cst_22 : f32 to vector<8x64xf32>
    %61 = arith.maximumf %59, %60 : vector<8x64xf32>
    %62 = arith.addf %29, %61 : vector<8x64xf32>
    %63 = arith.truncf %62 : vector<8x64xf32> to vector<8x64xbf16>
    %c1_23 = arith.constant 1 : index
    %c0_24 = arith.constant 0 : index
    %c0_25 = arith.constant 0 : index
    %64 = vector.load %arg3[%c1_23, %c0_24, %c0_25] : memref<10x64x64xbf16, #tpu.memory_space<vmem>>, vector<1x64x64xbf16>
    %65 = vector.shape_cast %64 : vector<1x64x64xbf16> to vector<64x64xbf16>
    %cst_26 = arith.constant dense<0.000000e+00> : vector<8x64xf32>
    %66 = tpu.matmul %63, %65, %cst_26 {dimension_numbers = #tpu.dot_dimension_numbers<[1], [0], [0], [1], [0, 0, 1, 1], [], []>} : vector<8x64xbf16>, vector<64x64xbf16>, vector<8x64xf32> -> vector<8x64xf32>
    %c1_27 = arith.constant 1 : index
    %c0_28 = arith.constant 0 : index
    %c0_29 = arith.constant 0 : index
    %67 = vector.load %arg4[%c1_27, %c0_28, %c0_29] : memref<10x2x64xf32, #tpu.memory_space<vmem>>, vector<1x2x64xf32>
    %68 = vector.shape_cast %67 : vector<1x2x64xf32> to vector<2x64xf32>
    %69 = vector.extract_strided_slice %68 {offsets = [0, 0], sizes = [1, 64], strides = [1, 1]} : vector<2x64xf32> to vector<1x64xf32>
    %70 = vector.extract_strided_slice %68 {offsets = [1, 0], sizes = [1, 64], strides = [1, 1]} : vector<2x64xf32> to vector<1x64xf32>
    %71 = arith.mulf %66, %66 : vector<8x64xf32>
    %72 = tpu.concatenate %66, %71 in 1 : vector<8x64xf32>, vector<8x64xf32> -> vector<8x128xf32>
    %cst_30 = arith.constant dense<0.000000e+00> : vector<128xf32>
    %73 = vector.multi_reduction <add>, %72, %cst_30 [0] : vector<8x128xf32> to vector<128xf32>
    %74 = vector.shape_cast %73 : vector<128xf32> to vector<1x128xf32>
    %75 = vector.extract_strided_slice %74 {offsets = [0, 0], sizes = [1, 64], strides = [1, 1]} : vector<1x128xf32> to vector<1x64xf32>
    %cst_31 = arith.constant 1.250000e-01 : f32
    %76 = vector.broadcast %cst_31 : f32 to vector<1x64xf32>
    %77 = arith.mulf %75, %76 : vector<1x64xf32>
    %78 = vector.extract_strided_slice %74 {offsets = [0, 64], sizes = [1, 64], strides = [1, 1]} : vector<1x128xf32> to vector<1x64xf32>
    %cst_32 = arith.constant 1.250000e-01 : f32
    %79 = vector.broadcast %cst_32 : f32 to vector<1x64xf32>
    %80 = arith.mulf %78, %79 : vector<1x64xf32>
    %81 = arith.mulf %77, %77 : vector<1x64xf32>
    %82 = arith.subf %80, %81 : vector<1x64xf32>
    %cst_33 = arith.constant 9.99999974E-6 : f32
    %83 = vector.broadcast %cst_33 : f32 to vector<1x64xf32>
    %84 = arith.addf %82, %83 : vector<1x64xf32>
    %85 = math.rsqrt %84 : vector<1x64xf32>
    %86 = arith.mulf %69, %85 : vector<1x64xf32>
    %87 = arith.mulf %77, %86 : vector<1x64xf32>
    %88 = arith.subf %70, %87 : vector<1x64xf32>
    %89 = vector.broadcast %86 : vector<1x64xf32> to vector<8x64xf32>
    %90 = arith.mulf %66, %89 : vector<8x64xf32>
    %91 = vector.broadcast %88 : vector<1x64xf32> to vector<8x64xf32>
    %92 = arith.addf %90, %91 : vector<8x64xf32>
    %cst_34 = arith.constant 0.000000e+00 : f32
    %93 = vector.broadcast %cst_34 : f32 to vector<8x64xf32>
    %94 = arith.maximumf %92, %93 : vector<8x64xf32>
    %95 = arith.addf %62, %94 : vector<8x64xf32>
    %96 = arith.truncf %95 : vector<8x64xf32> to vector<8x64xbf16>
    %c2 = arith.constant 2 : index
    %c0_35 = arith.constant 0 : index
    %c0_36 = arith.constant 0 : index
    %97 = vector.load %arg3[%c2, %c0_35, %c0_36] : memref<10x64x64xbf16, #tpu.memory_space<vmem>>, vector<1x64x64xbf16>
    %98 = vector.shape_cast %97 : vector<1x64x64xbf16> to vector<64x64xbf16>
    %cst_37 = arith.constant dense<0.000000e+00> : vector<8x64xf32>
    %99 = tpu.matmul %96, %98, %cst_37 {dimension_numbers = #tpu.dot_dimension_numbers<[1], [0], [0], [1], [0, 0, 1, 1], [], []>} : vector<8x64xbf16>, vector<64x64xbf16>, vector<8x64xf32> -> vector<8x64xf32>
    %c2_38 = arith.constant 2 : index
    %c0_39 = arith.constant 0 : index
    %c0_40 = arith.constant 0 : index
    %100 = vector.load %arg4[%c2_38, %c0_39, %c0_40] : memref<10x2x64xf32, #tpu.memory_space<vmem>>, vector<1x2x64xf32>
    %101 = vector.shape_cast %100 : vector<1x2x64xf32> to vector<2x64xf32>
    %102 = vector.extract_strided_slice %101 {offsets = [0, 0], sizes = [1, 64], strides = [1, 1]} : vector<2x64xf32> to vector<1x64xf32>
    %103 = vector.extract_strided_slice %101 {offsets = [1, 0], sizes = [1, 64], strides = [1, 1]} : vector<2x64xf32> to vector<1x64xf32>
    %104 = arith.mulf %99, %99 : vector<8x64xf32>
    %105 = tpu.concatenate %99, %104 in 1 : vector<8x64xf32>, vector<8x64xf32> -> vector<8x128xf32>
    %cst_41 = arith.constant dense<0.000000e+00> : vector<128xf32>
    %106 = vector.multi_reduction <add>, %105, %cst_41 [0] : vector<8x128xf32> to vector<128xf32>
    %107 = vector.shape_cast %106 : vector<128xf32> to vector<1x128xf32>
    %108 = vector.extract_strided_slice %107 {offsets = [0, 0], sizes = [1, 64], strides = [1, 1]} : vector<1x128xf32> to vector<1x64xf32>
    %cst_42 = arith.constant 1.250000e-01 : f32
    %109 = vector.broadcast %cst_42 : f32 to vector<1x64xf32>
    %110 = arith.mulf %108, %109 : vector<1x64xf32>
    %111 = vector.extract_strided_slice %107 {offsets = [0, 64], sizes = [1, 64], strides = [1, 1]} : vector<1x128xf32> to vector<1x64xf32>
    %cst_43 = arith.constant 1.250000e-01 : f32
    %112 = vector.broadcast %cst_43 : f32 to vector<1x64xf32>
    %113 = arith.mulf %111, %112 : vector<1x64xf32>
    %114 = arith.mulf %110, %110 : vector<1x64xf32>
    %115 = arith.subf %113, %114 : vector<1x64xf32>
    %cst_44 = arith.constant 9.99999974E-6 : f32
    %116 = vector.broadcast %cst_44 : f32 to vector<1x64xf32>
    %117 = arith.addf %115, %116 : vector<1x64xf32>
    %118 = math.rsqrt %117 : vector<1x64xf32>
    %119 = arith.mulf %102, %118 : vector<1x64xf32>
    %120 = arith.mulf %110, %119 : vector<1x64xf32>
    %121 = arith.subf %103, %120 : vector<1x64xf32>
    %122 = vector.broadcast %119 : vector<1x64xf32> to vector<8x64xf32>
    %123 = arith.mulf %99, %122 : vector<8x64xf32>
    %124 = vector.broadcast %121 : vector<1x64xf32> to vector<8x64xf32>
    %125 = arith.addf %123, %124 : vector<8x64xf32>
    %cst_45 = arith.constant 0.000000e+00 : f32
    %126 = vector.broadcast %cst_45 : f32 to vector<8x64xf32>
    %127 = arith.maximumf %125, %126 : vector<8x64xf32>
    %128 = arith.addf %95, %127 : vector<8x64xf32>
    %129 = arith.truncf %128 : vector<8x64xf32> to vector<8x64xbf16>
    %c3 = arith.constant 3 : index
    %c0_46 = arith.constant 0 : index
    %c0_47 = arith.constant 0 : index
    %130 = vector.load %arg3[%c3, %c0_46, %c0_47] : memref<10x64x64xbf16, #tpu.memory_space<vmem>>, vector<1x64x64xbf16>
    %131 = vector.shape_cast %130 : vector<1x64x64xbf16> to vector<64x64xbf16>
    %cst_48 = arith.constant dense<0.000000e+00> : vector<8x64xf32>
    %132 = tpu.matmul %129, %131, %cst_48 {dimension_numbers = #tpu.dot_dimension_numbers<[1], [0], [0], [1], [0, 0, 1, 1], [], []>} : vector<8x64xbf16>, vector<64x64xbf16>, vector<8x64xf32> -> vector<8x64xf32>
    %c3_49 = arith.constant 3 : index
    %c0_50 = arith.constant 0 : index
    %c0_51 = arith.constant 0 : index
    %133 = vector.load %arg4[%c3_49, %c0_50, %c0_51] : memref<10x2x64xf32, #tpu.memory_space<vmem>>, vector<1x2x64xf32>
    %134 = vector.shape_cast %133 : vector<1x2x64xf32> to vector<2x64xf32>
    %135 = vector.extract_strided_slice %134 {offsets = [0, 0], sizes = [1, 64], strides = [1, 1]} : vector<2x64xf32> to vector<1x64xf32>
    %136 = vector.extract_strided_slice %134 {offsets = [1, 0], sizes = [1, 64], strides = [1, 1]} : vector<2x64xf32> to vector<1x64xf32>
    %137 = arith.mulf %132, %132 : vector<8x64xf32>
    %138 = tpu.concatenate %132, %137 in 1 : vector<8x64xf32>, vector<8x64xf32> -> vector<8x128xf32>
    %cst_52 = arith.constant dense<0.000000e+00> : vector<128xf32>
    %139 = vector.multi_reduction <add>, %138, %cst_52 [0] : vector<8x128xf32> to vector<128xf32>
    %140 = vector.shape_cast %139 : vector<128xf32> to vector<1x128xf32>
    %141 = vector.extract_strided_slice %140 {offsets = [0, 0], sizes = [1, 64], strides = [1, 1]} : vector<1x128xf32> to vector<1x64xf32>
    %cst_53 = arith.constant 1.250000e-01 : f32
    %142 = vector.broadcast %cst_53 : f32 to vector<1x64xf32>
    %143 = arith.mulf %141, %142 : vector<1x64xf32>
    %144 = vector.extract_strided_slice %140 {offsets = [0, 64], sizes = [1, 64], strides = [1, 1]} : vector<1x128xf32> to vector<1x64xf32>
    %cst_54 = arith.constant 1.250000e-01 : f32
    %145 = vector.broadcast %cst_54 : f32 to vector<1x64xf32>
    %146 = arith.mulf %144, %145 : vector<1x64xf32>
    %147 = arith.mulf %143, %143 : vector<1x64xf32>
    %148 = arith.subf %146, %147 : vector<1x64xf32>
    %cst_55 = arith.constant 9.99999974E-6 : f32
    %149 = vector.broadcast %cst_55 : f32 to vector<1x64xf32>
    %150 = arith.addf %148, %149 : vector<1x64xf32>
    %151 = math.rsqrt %150 : vector<1x64xf32>
    %152 = arith.mulf %135, %151 : vector<1x64xf32>
    %153 = arith.mulf %143, %152 : vector<1x64xf32>
    %154 = arith.subf %136, %153 : vector<1x64xf32>
    %155 = vector.broadcast %152 : vector<1x64xf32> to vector<8x64xf32>
    %156 = arith.mulf %132, %155 : vector<8x64xf32>
    %157 = vector.broadcast %154 : vector<1x64xf32> to vector<8x64xf32>
    %158 = arith.addf %156, %157 : vector<8x64xf32>
    %cst_56 = arith.constant 0.000000e+00 : f32
    %159 = vector.broadcast %cst_56 : f32 to vector<8x64xf32>
    %160 = arith.maximumf %158, %159 : vector<8x64xf32>
    %161 = arith.addf %128, %160 : vector<8x64xf32>
    %162 = arith.truncf %161 : vector<8x64xf32> to vector<8x64xbf16>
    %c4 = arith.constant 4 : index
    %c0_57 = arith.constant 0 : index
    %c0_58 = arith.constant 0 : index
    %163 = vector.load %arg3[%c4, %c0_57, %c0_58] : memref<10x64x64xbf16, #tpu.memory_space<vmem>>, vector<1x64x64xbf16>
    %164 = vector.shape_cast %163 : vector<1x64x64xbf16> to vector<64x64xbf16>
    %cst_59 = arith.constant dense<0.000000e+00> : vector<8x64xf32>
    %165 = tpu.matmul %162, %164, %cst_59 {dimension_numbers = #tpu.dot_dimension_numbers<[1], [0], [0], [1], [0, 0, 1, 1], [], []>} : vector<8x64xbf16>, vector<64x64xbf16>, vector<8x64xf32> -> vector<8x64xf32>
    %c4_60 = arith.constant 4 : index
    %c0_61 = arith.constant 0 : index
    %c0_62 = arith.constant 0 : index
    %166 = vector.load %arg4[%c4_60, %c0_61, %c0_62] : memref<10x2x64xf32, #tpu.memory_space<vmem>>, vector<1x2x64xf32>
    %167 = vector.shape_cast %166 : vector<1x2x64xf32> to vector<2x64xf32>
    %168 = vector.extract_strided_slice %167 {offsets = [0, 0], sizes = [1, 64], strides = [1, 1]} : vector<2x64xf32> to vector<1x64xf32>
    %169 = vector.extract_strided_slice %167 {offsets = [1, 0], sizes = [1, 64], strides = [1, 1]} : vector<2x64xf32> to vector<1x64xf32>
    %170 = arith.mulf %165, %165 : vector<8x64xf32>
    %171 = tpu.concatenate %165, %170 in 1 : vector<8x64xf32>, vector<8x64xf32> -> vector<8x128xf32>
    %cst_63 = arith.constant dense<0.000000e+00> : vector<128xf32>
    %172 = vector.multi_reduction <add>, %171, %cst_63 [0] : vector<8x128xf32> to vector<128xf32>
    %173 = vector.shape_cast %172 : vector<128xf32> to vector<1x128xf32>
    %174 = vector.extract_strided_slice %173 {offsets = [0, 0], sizes = [1, 64], strides = [1, 1]} : vector<1x128xf32> to vector<1x64xf32>
    %cst_64 = arith.constant 1.250000e-01 : f32
    %175 = vector.broadcast %cst_64 : f32 to vector<1x64xf32>
    %176 = arith.mulf %174, %175 : vector<1x64xf32>
    %177 = vector.extract_strided_slice %173 {offsets = [0, 64], sizes = [1, 64], strides = [1, 1]} : vector<1x128xf32> to vector<1x64xf32>
    %cst_65 = arith.constant 1.250000e-01 : f32
    %178 = vector.broadcast %cst_65 : f32 to vector<1x64xf32>
    %179 = arith.mulf %177, %178 : vector<1x64xf32>
    %180 = arith.mulf %176, %176 : vector<1x64xf32>
    %181 = arith.subf %179, %180 : vector<1x64xf32>
    %cst_66 = arith.constant 9.99999974E-6 : f32
    %182 = vector.broadcast %cst_66 : f32 to vector<1x64xf32>
    %183 = arith.addf %181, %182 : vector<1x64xf32>
    %184 = math.rsqrt %183 : vector<1x64xf32>
    %185 = arith.mulf %168, %184 : vector<1x64xf32>
    %186 = arith.mulf %176, %185 : vector<1x64xf32>
    %187 = arith.subf %169, %186 : vector<1x64xf32>
    %188 = vector.broadcast %185 : vector<1x64xf32> to vector<8x64xf32>
    %189 = arith.mulf %165, %188 : vector<8x64xf32>
    %190 = vector.broadcast %187 : vector<1x64xf32> to vector<8x64xf32>
    %191 = arith.addf %189, %190 : vector<8x64xf32>
    %cst_67 = arith.constant 0.000000e+00 : f32
    %192 = vector.broadcast %cst_67 : f32 to vector<8x64xf32>
    %193 = arith.maximumf %191, %192 : vector<8x64xf32>
    %194 = arith.addf %161, %193 : vector<8x64xf32>
    %195 = arith.truncf %194 : vector<8x64xf32> to vector<8x64xbf16>
    %c5 = arith.constant 5 : index
    %c0_68 = arith.constant 0 : index
    %c0_69 = arith.constant 0 : index
    %196 = vector.load %arg3[%c5, %c0_68, %c0_69] : memref<10x64x64xbf16, #tpu.memory_space<vmem>>, vector<1x64x64xbf16>
    %197 = vector.shape_cast %196 : vector<1x64x64xbf16> to vector<64x64xbf16>
    %cst_70 = arith.constant dense<0.000000e+00> : vector<8x64xf32>
    %198 = tpu.matmul %195, %197, %cst_70 {dimension_numbers = #tpu.dot_dimension_numbers<[1], [0], [0], [1], [0, 0, 1, 1], [], []>} : vector<8x64xbf16>, vector<64x64xbf16>, vector<8x64xf32> -> vector<8x64xf32>
    %c5_71 = arith.constant 5 : index
    %c0_72 = arith.constant 0 : index
    %c0_73 = arith.constant 0 : index
    %199 = vector.load %arg4[%c5_71, %c0_72, %c0_73] : memref<10x2x64xf32, #tpu.memory_space<vmem>>, vector<1x2x64xf32>
    %200 = vector.shape_cast %199 : vector<1x2x64xf32> to vector<2x64xf32>
    %201 = vector.extract_strided_slice %200 {offsets = [0, 0], sizes = [1, 64], strides = [1, 1]} : vector<2x64xf32> to vector<1x64xf32>
    %202 = vector.extract_strided_slice %200 {offsets = [1, 0], sizes = [1, 64], strides = [1, 1]} : vector<2x64xf32> to vector<1x64xf32>
    %203 = arith.mulf %198, %198 : vector<8x64xf32>
    %204 = tpu.concatenate %198, %203 in 1 : vector<8x64xf32>, vector<8x64xf32> -> vector<8x128xf32>
    %cst_74 = arith.constant dense<0.000000e+00> : vector<128xf32>
    %205 = vector.multi_reduction <add>, %204, %cst_74 [0] : vector<8x128xf32> to vector<128xf32>
    %206 = vector.shape_cast %205 : vector<128xf32> to vector<1x128xf32>
    %207 = vector.extract_strided_slice %206 {offsets = [0, 0], sizes = [1, 64], strides = [1, 1]} : vector<1x128xf32> to vector<1x64xf32>
    %cst_75 = arith.constant 1.250000e-01 : f32
    %208 = vector.broadcast %cst_75 : f32 to vector<1x64xf32>
    %209 = arith.mulf %207, %208 : vector<1x64xf32>
    %210 = vector.extract_strided_slice %206 {offsets = [0, 64], sizes = [1, 64], strides = [1, 1]} : vector<1x128xf32> to vector<1x64xf32>
    %cst_76 = arith.constant 1.250000e-01 : f32
    %211 = vector.broadcast %cst_76 : f32 to vector<1x64xf32>
    %212 = arith.mulf %210, %211 : vector<1x64xf32>
    %213 = arith.mulf %209, %209 : vector<1x64xf32>
    %214 = arith.subf %212, %213 : vector<1x64xf32>
    %cst_77 = arith.constant 9.99999974E-6 : f32
    %215 = vector.broadcast %cst_77 : f32 to vector<1x64xf32>
    %216 = arith.addf %214, %215 : vector<1x64xf32>
    %217 = math.rsqrt %216 : vector<1x64xf32>
    %218 = arith.mulf %201, %217 : vector<1x64xf32>
    %219 = arith.mulf %209, %218 : vector<1x64xf32>
    %220 = arith.subf %202, %219 : vector<1x64xf32>
    %221 = vector.broadcast %218 : vector<1x64xf32> to vector<8x64xf32>
    %222 = arith.mulf %198, %221 : vector<8x64xf32>
    %223 = vector.broadcast %220 : vector<1x64xf32> to vector<8x64xf32>
    %224 = arith.addf %222, %223 : vector<8x64xf32>
    %cst_78 = arith.constant 0.000000e+00 : f32
    %225 = vector.broadcast %cst_78 : f32 to vector<8x64xf32>
    %226 = arith.maximumf %224, %225 : vector<8x64xf32>
    %227 = arith.addf %194, %226 : vector<8x64xf32>
    %228 = arith.truncf %227 : vector<8x64xf32> to vector<8x64xbf16>
    %c6 = arith.constant 6 : index
    %c0_79 = arith.constant 0 : index
    %c0_80 = arith.constant 0 : index
    %229 = vector.load %arg3[%c6, %c0_79, %c0_80] : memref<10x64x64xbf16, #tpu.memory_space<vmem>>, vector<1x64x64xbf16>
    %230 = vector.shape_cast %229 : vector<1x64x64xbf16> to vector<64x64xbf16>
    %cst_81 = arith.constant dense<0.000000e+00> : vector<8x64xf32>
    %231 = tpu.matmul %228, %230, %cst_81 {dimension_numbers = #tpu.dot_dimension_numbers<[1], [0], [0], [1], [0, 0, 1, 1], [], []>} : vector<8x64xbf16>, vector<64x64xbf16>, vector<8x64xf32> -> vector<8x64xf32>
    %c6_82 = arith.constant 6 : index
    %c0_83 = arith.constant 0 : index
    %c0_84 = arith.constant 0 : index
    %232 = vector.load %arg4[%c6_82, %c0_83, %c0_84] : memref<10x2x64xf32, #tpu.memory_space<vmem>>, vector<1x2x64xf32>
    %233 = vector.shape_cast %232 : vector<1x2x64xf32> to vector<2x64xf32>
    %234 = vector.extract_strided_slice %233 {offsets = [0, 0], sizes = [1, 64], strides = [1, 1]} : vector<2x64xf32> to vector<1x64xf32>
    %235 = vector.extract_strided_slice %233 {offsets = [1, 0], sizes = [1, 64], strides = [1, 1]} : vector<2x64xf32> to vector<1x64xf32>
    %236 = arith.mulf %231, %231 : vector<8x64xf32>
    %237 = tpu.concatenate %231, %236 in 1 : vector<8x64xf32>, vector<8x64xf32> -> vector<8x128xf32>
    %cst_85 = arith.constant dense<0.000000e+00> : vector<128xf32>
    %238 = vector.multi_reduction <add>, %237, %cst_85 [0] : vector<8x128xf32> to vector<128xf32>
    %239 = vector.shape_cast %238 : vector<128xf32> to vector<1x128xf32>
    %240 = vector.extract_strided_slice %239 {offsets = [0, 0], sizes = [1, 64], strides = [1, 1]} : vector<1x128xf32> to vector<1x64xf32>
    %cst_86 = arith.constant 1.250000e-01 : f32
    %241 = vector.broadcast %cst_86 : f32 to vector<1x64xf32>
    %242 = arith.mulf %240, %241 : vector<1x64xf32>
    %243 = vector.extract_strided_slice %239 {offsets = [0, 64], sizes = [1, 64], strides = [1, 1]} : vector<1x128xf32> to vector<1x64xf32>
    %cst_87 = arith.constant 1.250000e-01 : f32
    %244 = vector.broadcast %cst_87 : f32 to vector<1x64xf32>
    %245 = arith.mulf %243, %244 : vector<1x64xf32>
    %246 = arith.mulf %242, %242 : vector<1x64xf32>
    %247 = arith.subf %245, %246 : vector<1x64xf32>
    %cst_88 = arith.constant 9.99999974E-6 : f32
    %248 = vector.broadcast %cst_88 : f32 to vector<1x64xf32>
    %249 = arith.addf %247, %248 : vector<1x64xf32>
    %250 = math.rsqrt %249 : vector<1x64xf32>
    %251 = arith.mulf %234, %250 : vector<1x64xf32>
    %252 = arith.mulf %242, %251 : vector<1x64xf32>
    %253 = arith.subf %235, %252 : vector<1x64xf32>
    %254 = vector.broadcast %251 : vector<1x64xf32> to vector<8x64xf32>
    %255 = arith.mulf %231, %254 : vector<8x64xf32>
    %256 = vector.broadcast %253 : vector<1x64xf32> to vector<8x64xf32>
    %257 = arith.addf %255, %256 : vector<8x64xf32>
    %cst_89 = arith.constant 0.000000e+00 : f32
    %258 = vector.broadcast %cst_89 : f32 to vector<8x64xf32>
    %259 = arith.maximumf %257, %258 : vector<8x64xf32>
    %260 = arith.addf %227, %259 : vector<8x64xf32>
    %261 = arith.truncf %260 : vector<8x64xf32> to vector<8x64xbf16>
    %c7 = arith.constant 7 : index
    %c0_90 = arith.constant 0 : index
    %c0_91 = arith.constant 0 : index
    %262 = vector.load %arg3[%c7, %c0_90, %c0_91] : memref<10x64x64xbf16, #tpu.memory_space<vmem>>, vector<1x64x64xbf16>
    %263 = vector.shape_cast %262 : vector<1x64x64xbf16> to vector<64x64xbf16>
    %cst_92 = arith.constant dense<0.000000e+00> : vector<8x64xf32>
    %264 = tpu.matmul %261, %263, %cst_92 {dimension_numbers = #tpu.dot_dimension_numbers<[1], [0], [0], [1], [0, 0, 1, 1], [], []>} : vector<8x64xbf16>, vector<64x64xbf16>, vector<8x64xf32> -> vector<8x64xf32>
    %c7_93 = arith.constant 7 : index
    %c0_94 = arith.constant 0 : index
    %c0_95 = arith.constant 0 : index
    %265 = vector.load %arg4[%c7_93, %c0_94, %c0_95] : memref<10x2x64xf32, #tpu.memory_space<vmem>>, vector<1x2x64xf32>
    %266 = vector.shape_cast %265 : vector<1x2x64xf32> to vector<2x64xf32>
    %267 = vector.extract_strided_slice %266 {offsets = [0, 0], sizes = [1, 64], strides = [1, 1]} : vector<2x64xf32> to vector<1x64xf32>
    %268 = vector.extract_strided_slice %266 {offsets = [1, 0], sizes = [1, 64], strides = [1, 1]} : vector<2x64xf32> to vector<1x64xf32>
    %269 = arith.mulf %264, %264 : vector<8x64xf32>
    %270 = tpu.concatenate %264, %269 in 1 : vector<8x64xf32>, vector<8x64xf32> -> vector<8x128xf32>
    %cst_96 = arith.constant dense<0.000000e+00> : vector<128xf32>
    %271 = vector.multi_reduction <add>, %270, %cst_96 [0] : vector<8x128xf32> to vector<128xf32>
    %272 = vector.shape_cast %271 : vector<128xf32> to vector<1x128xf32>
    %273 = vector.extract_strided_slice %272 {offsets = [0, 0], sizes = [1, 64], strides = [1, 1]} : vector<1x128xf32> to vector<1x64xf32>
    %cst_97 = arith.constant 1.250000e-01 : f32
    %274 = vector.broadcast %cst_97 : f32 to vector<1x64xf32>
    %275 = arith.mulf %273, %274 : vector<1x64xf32>
    %276 = vector.extract_strided_slice %272 {offsets = [0, 64], sizes = [1, 64], strides = [1, 1]} : vector<1x128xf32> to vector<1x64xf32>
    %cst_98 = arith.constant 1.250000e-01 : f32
    %277 = vector.broadcast %cst_98 : f32 to vector<1x64xf32>
    %278 = arith.mulf %276, %277 : vector<1x64xf32>
    %279 = arith.mulf %275, %275 : vector<1x64xf32>
    %280 = arith.subf %278, %279 : vector<1x64xf32>
    %cst_99 = arith.constant 9.99999974E-6 : f32
    %281 = vector.broadcast %cst_99 : f32 to vector<1x64xf32>
    %282 = arith.addf %280, %281 : vector<1x64xf32>
    %283 = math.rsqrt %282 : vector<1x64xf32>
    %284 = arith.mulf %267, %283 : vector<1x64xf32>
    %285 = arith.mulf %275, %284 : vector<1x64xf32>
    %286 = arith.subf %268, %285 : vector<1x64xf32>
    %287 = vector.broadcast %284 : vector<1x64xf32> to vector<8x64xf32>
    %288 = arith.mulf %264, %287 : vector<8x64xf32>
    %289 = vector.broadcast %286 : vector<1x64xf32> to vector<8x64xf32>
    %290 = arith.addf %288, %289 : vector<8x64xf32>
    %cst_100 = arith.constant 0.000000e+00 : f32
    %291 = vector.broadcast %cst_100 : f32 to vector<8x64xf32>
    %292 = arith.maximumf %290, %291 : vector<8x64xf32>
    %293 = arith.addf %260, %292 : vector<8x64xf32>
    %294 = arith.truncf %293 : vector<8x64xf32> to vector<8x64xbf16>
    %c8 = arith.constant 8 : index
    %c0_101 = arith.constant 0 : index
    %c0_102 = arith.constant 0 : index
    %295 = vector.load %arg3[%c8, %c0_101, %c0_102] : memref<10x64x64xbf16, #tpu.memory_space<vmem>>, vector<1x64x64xbf16>
    %296 = vector.shape_cast %295 : vector<1x64x64xbf16> to vector<64x64xbf16>
    %cst_103 = arith.constant dense<0.000000e+00> : vector<8x64xf32>
    %297 = tpu.matmul %294, %296, %cst_103 {dimension_numbers = #tpu.dot_dimension_numbers<[1], [0], [0], [1], [0, 0, 1, 1], [], []>} : vector<8x64xbf16>, vector<64x64xbf16>, vector<8x64xf32> -> vector<8x64xf32>
    %c8_104 = arith.constant 8 : index
    %c0_105 = arith.constant 0 : index
    %c0_106 = arith.constant 0 : index
    %298 = vector.load %arg4[%c8_104, %c0_105, %c0_106] : memref<10x2x64xf32, #tpu.memory_space<vmem>>, vector<1x2x64xf32>
    %299 = vector.shape_cast %298 : vector<1x2x64xf32> to vector<2x64xf32>
    %300 = vector.extract_strided_slice %299 {offsets = [0, 0], sizes = [1, 64], strides = [1, 1]} : vector<2x64xf32> to vector<1x64xf32>
    %301 = vector.extract_strided_slice %299 {offsets = [1, 0], sizes = [1, 64], strides = [1, 1]} : vector<2x64xf32> to vector<1x64xf32>
    %302 = arith.mulf %297, %297 : vector<8x64xf32>
    %303 = tpu.concatenate %297, %302 in 1 : vector<8x64xf32>, vector<8x64xf32> -> vector<8x128xf32>
    %cst_107 = arith.constant dense<0.000000e+00> : vector<128xf32>
    %304 = vector.multi_reduction <add>, %303, %cst_107 [0] : vector<8x128xf32> to vector<128xf32>
    %305 = vector.shape_cast %304 : vector<128xf32> to vector<1x128xf32>
    %306 = vector.extract_strided_slice %305 {offsets = [0, 0], sizes = [1, 64], strides = [1, 1]} : vector<1x128xf32> to vector<1x64xf32>
    %cst_108 = arith.constant 1.250000e-01 : f32
    %307 = vector.broadcast %cst_108 : f32 to vector<1x64xf32>
    %308 = arith.mulf %306, %307 : vector<1x64xf32>
    %309 = vector.extract_strided_slice %305 {offsets = [0, 64], sizes = [1, 64], strides = [1, 1]} : vector<1x128xf32> to vector<1x64xf32>
    %cst_109 = arith.constant 1.250000e-01 : f32
    %310 = vector.broadcast %cst_109 : f32 to vector<1x64xf32>
    %311 = arith.mulf %309, %310 : vector<1x64xf32>
    %312 = arith.mulf %308, %308 : vector<1x64xf32>
    %313 = arith.subf %311, %312 : vector<1x64xf32>
    %cst_110 = arith.constant 9.99999974E-6 : f32
    %314 = vector.broadcast %cst_110 : f32 to vector<1x64xf32>
    %315 = arith.addf %313, %314 : vector<1x64xf32>
    %316 = math.rsqrt %315 : vector<1x64xf32>
    %317 = arith.mulf %300, %316 : vector<1x64xf32>
    %318 = arith.mulf %308, %317 : vector<1x64xf32>
    %319 = arith.subf %301, %318 : vector<1x64xf32>
    %320 = vector.broadcast %317 : vector<1x64xf32> to vector<8x64xf32>
    %321 = arith.mulf %297, %320 : vector<8x64xf32>
    %322 = vector.broadcast %319 : vector<1x64xf32> to vector<8x64xf32>
    %323 = arith.addf %321, %322 : vector<8x64xf32>
    %cst_111 = arith.constant 0.000000e+00 : f32
    %324 = vector.broadcast %cst_111 : f32 to vector<8x64xf32>
    %325 = arith.maximumf %323, %324 : vector<8x64xf32>
    %326 = arith.addf %293, %325 : vector<8x64xf32>
    %327 = arith.truncf %326 : vector<8x64xf32> to vector<8x64xbf16>
    %c9 = arith.constant 9 : index
    %c0_112 = arith.constant 0 : index
    %c0_113 = arith.constant 0 : index
    %328 = vector.load %arg3[%c9, %c0_112, %c0_113] : memref<10x64x64xbf16, #tpu.memory_space<vmem>>, vector<1x64x64xbf16>
    %329 = vector.shape_cast %328 : vector<1x64x64xbf16> to vector<64x64xbf16>
    %cst_114 = arith.constant dense<0.000000e+00> : vector<8x64xf32>
    %330 = tpu.matmul %327, %329, %cst_114 {dimension_numbers = #tpu.dot_dimension_numbers<[1], [0], [0], [1], [0, 0, 1, 1], [], []>} : vector<8x64xbf16>, vector<64x64xbf16>, vector<8x64xf32> -> vector<8x64xf32>
    %c9_115 = arith.constant 9 : index
    %c0_116 = arith.constant 0 : index
    %c0_117 = arith.constant 0 : index
    %331 = vector.load %arg4[%c9_115, %c0_116, %c0_117] : memref<10x2x64xf32, #tpu.memory_space<vmem>>, vector<1x2x64xf32>
    %332 = vector.shape_cast %331 : vector<1x2x64xf32> to vector<2x64xf32>
    %333 = vector.extract_strided_slice %332 {offsets = [0, 0], sizes = [1, 64], strides = [1, 1]} : vector<2x64xf32> to vector<1x64xf32>
    %334 = vector.extract_strided_slice %332 {offsets = [1, 0], sizes = [1, 64], strides = [1, 1]} : vector<2x64xf32> to vector<1x64xf32>
    %335 = arith.mulf %330, %330 : vector<8x64xf32>
    %336 = tpu.concatenate %330, %335 in 1 : vector<8x64xf32>, vector<8x64xf32> -> vector<8x128xf32>
    %cst_118 = arith.constant dense<0.000000e+00> : vector<128xf32>
    %337 = vector.multi_reduction <add>, %336, %cst_118 [0] : vector<8x128xf32> to vector<128xf32>
    %338 = vector.shape_cast %337 : vector<128xf32> to vector<1x128xf32>
    %339 = vector.extract_strided_slice %338 {offsets = [0, 0], sizes = [1, 64], strides = [1, 1]} : vector<1x128xf32> to vector<1x64xf32>
    %cst_119 = arith.constant 1.250000e-01 : f32
    %340 = vector.broadcast %cst_119 : f32 to vector<1x64xf32>
    %341 = arith.mulf %339, %340 : vector<1x64xf32>
    %342 = vector.extract_strided_slice %338 {offsets = [0, 64], sizes = [1, 64], strides = [1, 1]} : vector<1x128xf32> to vector<1x64xf32>
    %cst_120 = arith.constant 1.250000e-01 : f32
    %343 = vector.broadcast %cst_120 : f32 to vector<1x64xf32>
    %344 = arith.mulf %342, %343 : vector<1x64xf32>
    %345 = arith.mulf %341, %341 : vector<1x64xf32>
    %346 = arith.subf %344, %345 : vector<1x64xf32>
    %cst_121 = arith.constant 9.99999974E-6 : f32
    %347 = vector.broadcast %cst_121 : f32 to vector<1x64xf32>
    %348 = arith.addf %346, %347 : vector<1x64xf32>
    %349 = math.rsqrt %348 : vector<1x64xf32>
    %350 = arith.mulf %333, %349 : vector<1x64xf32>
    %351 = arith.mulf %341, %350 : vector<1x64xf32>
    %352 = arith.subf %334, %351 : vector<1x64xf32>
    %353 = vector.broadcast %350 : vector<1x64xf32> to vector<8x64xf32>
    %354 = arith.mulf %330, %353 : vector<8x64xf32>
    %355 = vector.broadcast %352 : vector<1x64xf32> to vector<8x64xf32>
    %356 = arith.addf %354, %355 : vector<8x64xf32>
    %cst_122 = arith.constant 0.000000e+00 : f32
    %357 = vector.broadcast %cst_122 : f32 to vector<8x64xf32>
    %358 = arith.maximumf %356, %357 : vector<8x64xf32>
    %359 = arith.addf %326, %358 : vector<8x64xf32>
    %c2_123 = arith.constant 2 : index
    %c0_124 = arith.constant 0 : index
    %360 = vector.load %arg2[%c2_123, %c0_124] : memref<3x64xf32, #tpu.memory_space<vmem>>, vector<1x64xf32>
    %361 = vector.extract_strided_slice %360 {offsets = [0, 0], sizes = [1, 2], strides = [1, 1]} : vector<1x64xf32> to vector<1x2xf32>
    %362 = arith.truncf %359 : vector<8x64xf32> to vector<8x64xbf16>
    %c0_125 = arith.constant 0 : index
    %c0_126 = arith.constant 0 : index
    %363 = vector.load %arg5[%c0_125, %c0_126] : memref<64x2xbf16, #tpu.memory_space<vmem>>, vector<64x2xbf16>
    %cst_127 = arith.constant dense<0.000000e+00> : vector<8x2xf32>
    %364 = tpu.matmul %362, %363, %cst_127 {dimension_numbers = #tpu.dot_dimension_numbers<[1], [0], [0], [1], [0, 0, 1, 1], [], []>} : vector<8x64xbf16>, vector<64x2xbf16>, vector<8x2xf32> -> vector<8x2xf32>
    %365 = vector.broadcast %361 : vector<1x2xf32> to vector<8x2xf32>
    %366 = arith.addf %364, %365 : vector<8x2xf32>
    %c0_128 = arith.constant 0 : index
    %c0_129 = arith.constant 0 : index
    %367 = vector.load %arg6[%c0_128, %c0_129] : memref<8x2xf32, #tpu.memory_space<vmem>>, vector<8x2xf32>
    tpu.vector_store %arg6[%c0_128, %c0_129], %366 {strides = array<i32>} : memref<8x2xf32, #tpu.memory_space<vmem>>, vector<8x2xf32>,
    return
  }
}

</mosaic_0001>

<bundles_post_ra>
// kernel: tpu_custom_call.1
= control target key start
LH: loop header
LB: loop body
LE: loop exit
PB: predicated region body
PF: predicated region fallthrough
CT: control target
= control target key end

     0   :  { %11 = vsyncpa [#allocation3], 0  ;;  %s1664_s0 = inlined_call_operand.vmem [shape: f32[8,32], index: 0, kind: input, shape index: {}]   ;;  %s1665_s1 = inlined_call_operand.hbm [shape: bf16[32,64], index: 1, kind: input, shape index: {}]   ;;  %s1666_s2 = inlined_call_operand.vmem [shape: f32[3,64], index: 2, kind: input, shape index: {}]   ;;  %s1667_s3 = inlined_call_operand.hbm [shape: bf16[10,64,64], index: 3, kind: input, shape index: {}]   ;;  %s1668_s4 = inlined_call_operand.vmem [shape: f32[10,2,64], index: 4, kind: input, shape index: {}]   ;;  %s1669_s5 = inlined_call_operand.vmem [shape: bf16[64,2], index: 5, kind: input, shape index: {}]   ;;  %s1670_s6 = inlined_call_operand.vmem [shape: f32[8,2], index: 6, kind: output, shape index: {}]  }
   0x1   :  { %s19_s23 = sshll.u32 %s1665_s1, 4  ;;  %s20_s23 = int_to_ptr.hbm [resolvable:$true] %s19_s23 }
   0x2   :  { %12 = vsyncpa [#allocation5], 0  ;;  %s1503_s24 = smov [#allocation2]   ;;  %s34_s28 = sshll.u32 %s1667_s3, 4  ;;  %s35_s28 = int_to_ptr.hbm [resolvable:$true] %s34_s28 }
   0x3   :  { %s21_s25 = sshll.u32 %s1503_s24, 4  ;;  %s1504_s29 = smov 64   ;;  %s22_s25 = int_to_ptr.vmem [resolvable:$true] %s21_s25 }
   0x4   :  { %s1505_s30 = smov 4   ;;  %s1506_s7 = smov [#allocation4]  }
   0x5   :  { %27 = dma.hbm_to_vmem [thread:$0]  %s20_s23, 256, %s22_s25, [#allocation3], %s1504_s29, %s1504_s29, %s1505_s30  }
   0x6   :  { %s36_s8 = sshll.u32 %s1506_s7, 4  ;;  %s37_s8 = int_to_ptr.vmem [resolvable:$true] %s36_s8 }
   0x7   :  { %42 = dma.hbm_to_vmem [thread:$0]  %s35_s28, 5120, %s37_s8, [#allocation5], %s1504_s29, %s1504_s29, %s1505_s30  }
   0x8   :  { %1499 = dma.done.wait [#allocation3], 256  }
   0x9   :  { %1500 = vsyncadd [#allocation3], 4294967040 }
   0xa   :  { %1501 = dma.done.wait [#allocation5], 5120  }
   0xb   :  { %1502 = vsyncadd [#allocation5], 4294962176  ;;  %v1379_v0 = vld [vmem:[#allocation2 + $0x8] sm:$0xff]  ;;  %v1378_v1 = vld [vmem:[#allocation2] sm:$0xff]  ;;  %vm74_vm0 = vcmask 261120   ;;  %vm98_vm1 = vcmask 523264  }
   0xc   :  { %84 = vmatpush.bf16.msra.mxu0 %v1379_v0  ;;  %v56_v2 = vld [vmem:[%s1664_s0] sm:$0xff]  ;;  %v1383_v17 = vld [vmem:[#allocation4 + $0x18] sm:$0xff]  ;;  %v1381_v29 = vld [vmem:[#allocation4 + $0x8] sm:$0xff] }
   0xd   :  { %v57_v3 = vpack.c.bf16 %v56_v2, %v56_v2  ;;  %176 = vmatpush.bf16.msra.mxu1 %v1383_v17  ;;  %v1382_v28 = vld [vmem:[#allocation4 + $0x10] sm:$0xff]  ;;  %v1380_v30 = vld [vmem:[#allocation4] sm:$0xff]  ;;  %v1387_v2 = vld [vmem:[#allocation4 + $0x38] sm:$0xff] }
   0xe   :  { %v91_v31 = vld [vmem:[%s1666_s2] sm:$0x1]  ;;  %v92_v34 = vld [vmem:[%s1666_s2 + $0x1] sm:$0x1]  ;;  %273 = vmatpush.bf16.msra.mxu2 %v1387_v2 }
  0x10   :  { %85 = vmatpush.bf16.msra.mxu0 %v1378_v1 }
  0x11   :  { %177 = vmatpush.bf16.msra.mxu1 %v1382_v28 }
  0x13   :  { %1181 = vmatmul.msk.bf16.vlgmr.msra.gmra.mxu0 %vm74_vm0, %v57_v3  ;;  %v1386_v3 = vld [vmem:[#allocation4 + $0x30] sm:$0xff] }
  0x14   :  { %274 = vmatpush.bf16.msra.mxu2 %v1386_v3 }
  0x15   :  { %178 = vmatpush.bf16.msra.mxu1 %v1381_v29 }
  0x19   :  { %179 = vmatpush.bf16.msra.mxu1 %v1380_v30 }
  0x90   :  { %v87_v4 = vpop.f32.mrf.mxu0 }
  0x91   :  { %v93_v5 = vmul.f32 %v87_v4, %v87_v4 }
  0x93   :  { %95 = vrot.lane.b32.xlu0 %v93_v5, %s1504_s29  ;;  %v1384_v5 = vld [vmem:[#allocation4 + $0x20] sm:$0xff] }
  0x98   :  { %v89_v6 = vpop.f32.mrf.mxu0 }
  0x99   :  { %v185_v6 = vld [vmem:[%s1668_s4] sm:$0x3] }
 0x105   :  { %v96_v7 = vpop.permute.xlu0 %95 }
 0x106   :  { %v99_v8 = vsel %vm98_vm1, %v87_v4, %v96_v7 }
 0x107   :  { %v100_v9 = vrot.slane %v99_v8, 4 }
 0x109   :  { %v101_v10 = vadd.f32 %v100_v9, %v99_v8 }
 0x10b   :  { %v102_v11 = vrot.slane %v101_v10, 2 }
 0x10d   :  { %v103_v12 = vadd.f32 %v102_v11, %v101_v10 }
 0x10f   :  { %v104_v13 = vrot.slane %v103_v12, 1 }
 0x111   :  { %v105_v14 = vadd.f32 %v104_v13, %v103_v12 }
 0x113   :  { %v106_v15 = vmul.f32 0.125, %v105_v14 }
 0x115   :  { %v107_v16 = vmul.f32 %v106_v15, %v106_v15 }
 0x117   :  { %109 = vrot.lane.b32.xlu0 %v107_v16, %s1504_s29 }
 0x189   :  { %v110_v18 = vpop.permute.xlu0 %109 }
 0x18a   :  { %v112_v19 = vsub.f32 %v106_v15, %v110_v18 }
 0x18c   :  { %v113_v20 = vadd.f32 1e-05, %v112_v19 }
 0x18e   :  { %1429 = vrsqrt.f32 %v113_v20  ;;  %vm120_vm3 = vweird.f32 %v113_v20 }
 0x194   :  { %v1430_v21 = vpop.eup %1429 }
 0x195   :  { %v115_v22 = vmul.f32 %v1430_v21, %v113_v20  ;;  %vm121_vm2 = vweird.f32 %v1430_v21 }
 0x196   :  { %vm122_vm4 = vmor %vm120_vm3, %vm121_vm2 }
 0x197   :  { %v116_v23 = vmul.f32 %v1430_v21, %v115_v22 }
 0x199   :  { %v117_v24 = vmul.f32 0.5, %v116_v23 }
 0x19b   :  { %v118_v25 = vsub.f32 1.5, %v117_v24 }
 0x19d   :  { %v119_v26 = vmul.f32 %v1430_v21, %v118_v25 }
 0x19f   :  { %v123_v27 = vsel %vm122_vm4, %v1430_v21, %v119_v26 }
 0x1a0   :  { %125 = vrot.lane.b32.xlu1 %v123_v27, %s1504_s29 }
 0x212   :  { %v126_v32 = vpop.permute.xlu1 %125 }
 0x213   :  { %v128_v33 = vmul.f32 %v126_v32, %v91_v31 }
 0x215   :  { %v129_v35 = vmul.f32 %v128_v33, %v106_v15  ;;  %v131_v36 = vperm.slane %v128_v33, 0 }
 0x217   :  { %v130_v37 = vsub.f32 %v92_v34, %v129_v35  ;;  %v132_v38 = vmul.f32 %v131_v36, %v87_v4  ;;  %v1385_v4 = vld [vmem:[#allocation4 + $0x28] sm:$0xff] }
 0x218   :  { %275 = vmatpush.bf16.msra.mxu2 %v1385_v4 }
 0x219   :  { %v133_v39 = vperm.slane %v130_v37, 0 }
 0x21b   :  { %v134_v40 = vadd.f32 %v133_v39, %v132_v38 }
 0x21c   :  { %276 = vmatpush.bf16.msra.mxu2 %v1384_v5 }
 0x21d   :  { %v135_v41 = vmax.f32 %v134_v40, 0.0 }
 0x21f   :  { %v136_v42 = vpack.c.bf16 %v135_v41, %v135_v41 }
 0x221   :  { %1198 = vmatmul.msk.bf16.vlgmr.msra.gmra.mxu1 %vm98_vm1, %v136_v42  ;;  %v1391_v42 = vld [vmem:[#allocation4 + $0x58] sm:$0xff] }
 0x222   :  { %371 = vmatpush.bf16.msra.mxu3 %v1391_v42 }
 0x29e   :  { %v181_v43 = vpop.f32.mrf.mxu1 }
 0x29f   :  { %v186_v44 = vmul.f32 %v181_v43, %v181_v43 }
 0x2a1   :  { %188 = vrot.lane.b32.xlu1 %v186_v44, %s1504_s29  ;;  %v1389_v44 = vld [vmem:[#allocation4 + $0x48] sm:$0xff] }
 0x2a6   :  { %v183_v45 = vpop.f32.mrf.mxu1 }
 0x2a7   :  { %v1388_v45 = vld [vmem:[#allocation4 + $0x40] sm:$0xff] }
 0x313   :  { %v189_v46 = vpop.permute.xlu1 %188 }
 0x314   :  { %v191_v47 = vsel %vm98_vm1, %v181_v43, %v189_v46  ;;  %v1216_v46 = vld [vmem:[%s1668_s4 + $0x2] sm:$0x3] }
 0x315   :  { %v192_v48 = vrot.slane %v191_v47, 4 }
 0x317   :  { %v193_v49 = vadd.f32 %v192_v48, %v191_v47 }
 0x319   :  { %v194_v50 = vrot.slane %v193_v49, 2 }
 0x31b   :  { %v195_v51 = vadd.f32 %v194_v50, %v193_v49 }
 0x31d   :  { %v196_v52 = vrot.slane %v195_v51, 1 }
 0x31f   :  { %v197_v53 = vadd.f32 %v196_v52, %v195_v51 }
 0x321   :  { %v198_v54 = vmul.f32 0.125, %v197_v53 }
 0x323   :  { %v199_v55 = vmul.f32 %v198_v54, %v198_v54 }
 0x325   :  { %201 = vrot.lane.b32.xlu2 %v199_v55, %s1504_s29 }
 0x37f   :  { %v202_v56 = vpop.permute.xlu2 %201 }
 0x380   :  { %v204_v57 = vsub.f32 %v198_v54, %v202_v56 }
 0x382   :  { %v205_v58 = vadd.f32 1e-05, %v204_v57 }
 0x384   :  { %1431 = vrsqrt.f32 %v205_v58  ;;  %vm212_vm6 = vweird.f32 %v205_v58 }
 0x38a   :  { %v1432_v59 = vpop.eup %1431 }
 0x38b   :  { %v207_v60 = vmul.f32 %v1432_v59, %v205_v58  ;;  %vm213_vm5 = vweird.f32 %v1432_v59 }
 0x38c   :  { %vm214_vm7 = vmor %vm212_vm6, %vm213_vm5 }
 0x38d   :  { %v208_v61 = vmul.f32 %v1432_v59, %v207_v60 }
 0x38f   :  { %v209_v62 = vmul.f32 0.5, %v208_v61 }
 0x391   :  { %v210_v63 = vsub.f32 1.5, %v209_v62 }
 0x393   :  { %v211_v0 = vmul.f32 %v1432_v59, %v210_v63 }
 0x395   :  { %v215_v1 = vsel %vm214_vm7, %v1432_v59, %v211_v0 }
 0x396   :  { %217 = vrot.lane.b32.xlu2 %v215_v1, %s1504_s29 }
 0x3f0   :  { %v218_v7 = vpop.permute.xlu2 %217 }
 0x3f1   :  { %v220_v8 = vmul.f32 %v218_v7, %v185_v6 }
 0x3f3   :  { %v221_v9 = vmul.f32 %v220_v8, %v198_v54  ;;  %v226_v11 = vperm.slane %v220_v8, 0 }
 0x3f5   :  { %v223_v10 = vrot.slane %v221_v9, 7  ;;  %v227_v13 = vmul.f32 %v226_v11, %v181_v43  ;;  %v1390_v43 = vld [vmem:[#allocation4 + $0x50] sm:$0xff] }
 0x3f6   :  { %372 = vmatpush.bf16.msra.mxu3 %v1390_v43 }
 0x3f7   :  { %v225_v12 = vsub.f32 %v185_v6, %v223_v10 }
 0x3f9   :  { %v228_v14 = vperm.slane %v225_v12, 1 }
 0x3fa   :  { %373 = vmatpush.bf16.msra.mxu3 %v1389_v44 }
 0x3fb   :  { %v229_v15 = vadd.f32 %v228_v14, %v227_v13 }
 0x3fd   :  { %v230_v16 = vmax.f32 %v229_v15, 0.0 }
 0x3fe   :  { %374 = vmatpush.bf16.msra.mxu3 %v1388_v45 }
 0x3ff   :  { %v231_v17 = vadd.f32 %v230_v16, %v135_v41 }
 0x401   :  { %v232_v18 = vpack.c.bf16 %v231_v17, %v231_v17 }
 0x403   :  { %1215 = vmatmul.msk.bf16.vlgmr.msra.gmra.mxu2 %vm98_vm1, %v232_v18  ;;  %v1395_v18 = vld [vmem:[#allocation4 + $0x78] sm:$0xff] }
 0x404   :  { %469 = vmatpush.bf16.msrb.mxu0 %v1395_v18 }
 0x486   :  { %v278_v19 = vpop.f32.mrf.mxu2 }
 0x487   :  { %v284_v20 = vmul.f32 %v278_v19, %v278_v19 }
 0x489   :  { %286 = vrot.lane.b32.xlu0 %v284_v20, %s1504_s29  ;;  %v1393_v20 = vld [vmem:[#allocation4 + $0x68] sm:$0xff] }
 0x48e   :  { %v280_v21 = vpop.f32.mrf.mxu2 }
 0x48f   :  { %v1392_v21 = vld [vmem:[#allocation4 + $0x60] sm:$0xff] }
 0x4fb   :  { %v287_v22 = vpop.permute.xlu0 %286 }
 0x4fc   :  { %v289_v23 = vsel %vm98_vm1, %v278_v19, %v287_v22  ;;  %v1234_v22 = vld [vmem:[%s1668_s4 + $0x4] sm:$0x3] }
 0x4fd   :  { %v290_v24 = vrot.slane %v289_v23, 4 }
 0x4ff   :  { %v291_v25 = vadd.f32 %v290_v24, %v289_v23 }
 0x501   :  { %v292_v26 = vrot.slane %v291_v25, 2 }
 0x503   :  { %v293_v27 = vadd.f32 %v292_v26, %v291_v25 }
 0x505   :  { %v294_v28 = vrot.slane %v293_v27, 1 }
 0x507   :  { %v295_v29 = vadd.f32 %v294_v28, %v293_v27 }
 0x509   :  { %v296_v30 = vmul.f32 0.125, %v295_v29 }
 0x50b   :  { %v297_v31 = vmul.f32 %v296_v30, %v296_v30 }
 0x50d   :  { %299 = vrot.lane.b32.xlu1 %v297_v31, %s1504_s29 }
 0x57f   :  { %v300_v32 = vpop.permute.xlu1 %299 }
 0x580   :  { %v302_v33 = vsub.f32 %v296_v30, %v300_v32 }
 0x582   :  { %v303_v34 = vadd.f32 1e-05, %v302_v33 }
 0x584   :  { %1433 = vrsqrt.f32 %v303_v34  ;;  %vm310_vm9 = vweird.f32 %v303_v34 }
 0x58a   :  { %v1434_v35 = vpop.eup %1433 }
 0x58b   :  { %v305_v36 = vmul.f32 %v1434_v35, %v303_v34  ;;  %vm311_vm8 = vweird.f32 %v1434_v35 }
 0x58c   :  { %vm312_vm10 = vmor %vm310_vm9, %vm311_vm8 }
 0x58d   :  { %v306_v37 = vmul.f32 %v1434_v35, %v305_v36 }
 0x58f   :  { %v307_v38 = vmul.f32 0.5, %v306_v37 }
 0x591   :  { %v308_v39 = vsub.f32 1.5, %v307_v38 }
 0x593   :  { %v309_v40 = vmul.f32 %v1434_v35, %v308_v39 }
 0x595   :  { %v313_v41 = vsel %vm312_vm10, %v1434_v35, %v309_v40 }
 0x596   :  { %315 = vrot.lane.b32.xlu2 %v313_v41, %s1504_s29 }
 0x5f0   :  { %v316_v47 = vpop.permute.xlu2 %315 }
 0x5f1   :  { %v318_v48 = vmul.f32 %v1216_v46, %v316_v47 }
 0x5f3   :  { %v319_v49 = vmul.f32 %v318_v48, %v296_v30  ;;  %v324_v51 = vperm.slane %v318_v48, 0 }
 0x5f5   :  { %v321_v50 = vrot.slane %v319_v49, 7  ;;  %v325_v53 = vmul.f32 %v324_v51, %v278_v19  ;;  %v1394_v19 = vld [vmem:[#allocation4 + $0x70] sm:$0xff] }
 0x5f6   :  { %470 = vmatpush.bf16.msrb.mxu0 %v1394_v19 }
 0x5f7   :  { %v323_v52 = vsub.f32 %v1216_v46, %v321_v50 }
 0x5f9   :  { %v326_v54 = vperm.slane %v323_v52, 1 }
 0x5fa   :  { %471 = vmatpush.bf16.msrb.mxu0 %v1393_v20 }
 0x5fb   :  { %v327_v55 = vadd.f32 %v326_v54, %v325_v53 }
 0x5fd   :  { %v328_v56 = vmax.f32 %v327_v55, 0.0 }
 0x5fe   :  { %472 = vmatpush.bf16.msrb.mxu0 %v1392_v21 }
 0x5ff   :  { %v329_v57 = vadd.f32 %v328_v56, %v231_v17 }
 0x601   :  { %v330_v58 = vpack.c.bf16 %v329_v57, %v329_v57 }
 0x603   :  { %1233 = vmatmul.msk.bf16.vlgmr.msra.gmra.mxu3 %vm98_vm1, %v330_v58  ;;  %v1399_v58 = vld [vmem:[#allocation4 + $0x98] sm:$0xff] }
 0x604   :  { %567 = vmatpush.bf16.msrb.mxu1 %v1399_v58 }
 0x686   :  { %v376_v59 = vpop.f32.mrf.mxu3 }
 0x687   :  { %v382_v60 = vmul.f32 %v376_v59, %v376_v59 }
 0x689   :  { %384 = vrot.lane.b32.xlu0 %v382_v60, %s1504_s29  ;;  %v1397_v60 = vld [vmem:[#allocation4 + $0x88] sm:$0xff] }
 0x68e   :  { %v378_v61 = vpop.f32.mrf.mxu3 }
 0x68f   :  { %v1396_v61 = vld [vmem:[#allocation4 + $0x80] sm:$0xff] }
 0x6fb   :  { %v385_v62 = vpop.permute.xlu0 %384 }
 0x6fc   :  { %v387_v63 = vsel %vm98_vm1, %v376_v59, %v385_v62  ;;  %v1252_v62 = vld [vmem:[%s1668_s4 + $0x6] sm:$0x3] }
 0x6fd   :  { %v388_v0 = vrot.slane %v387_v63, 4 }
 0x6ff   :  { %v389_v1 = vadd.f32 %v388_v0, %v387_v63 }
 0x701   :  { %v390_v2 = vrot.slane %v389_v1, 2 }
 0x703   :  { %v391_v3 = vadd.f32 %v390_v2, %v389_v1 }
 0x705   :  { %v392_v4 = vrot.slane %v391_v3, 1 }
 0x707   :  { %v393_v5 = vadd.f32 %v392_v4, %v391_v3 }
 0x709   :  { %v394_v6 = vmul.f32 0.125, %v393_v5 }
 0x70b   :  { %v395_v7 = vmul.f32 %v394_v6, %v394_v6 }
 0x70d   :  { %397 = vrot.lane.b32.xlu1 %v395_v7, %s1504_s29 }
 0x77f   :  { %v398_v8 = vpop.permute.xlu1 %397 }
 0x780   :  { %v400_v9 = vsub.f32 %v394_v6, %v398_v8 }
 0x782   :  { %v401_v10 = vadd.f32 1e-05, %v400_v9 }
 0x784   :  { %1435 = vrsqrt.f32 %v401_v10  ;;  %vm408_vm12 = vweird.f32 %v401_v10 }
 0x78a   :  { %v1436_v11 = vpop.eup %1435 }
 0x78b   :  { %v403_v12 = vmul.f32 %v1436_v11, %v401_v10  ;;  %vm409_vm11 = vweird.f32 %v1436_v11 }
 0x78c   :  { %vm410_vm13 = vmor %vm408_vm12, %vm409_vm11 }
 0x78d   :  { %v404_v13 = vmul.f32 %v1436_v11, %v403_v12 }
 0x78f   :  { %v405_v14 = vmul.f32 0.5, %v404_v13 }
 0x791   :  { %v406_v15 = vsub.f32 1.5, %v405_v14 }
 0x793   :  { %v407_v16 = vmul.f32 %v1436_v11, %v406_v15 }
 0x795   :  { %v411_v17 = vsel %vm410_vm13, %v1436_v11, %v407_v16 }
 0x796   :  { %413 = vrot.lane.b32.xlu2 %v411_v17, %s1504_s29 }
 0x7f0   :  { %v414_v23 = vpop.permute.xlu2 %413 }
 0x7f1   :  { %v416_v24 = vmul.f32 %v1234_v22, %v414_v23 }
 0x7f3   :  { %v417_v25 = vmul.f32 %v416_v24, %v394_v6  ;;  %v422_v27 = vperm.slane %v416_v24, 0 }
 0x7f5   :  { %v419_v26 = vrot.slane %v417_v25, 7  ;;  %v423_v29 = vmul.f32 %v422_v27, %v376_v59  ;;  %v1398_v59 = vld [vmem:[#allocation4 + $0x90] sm:$0xff] }
 0x7f6   :  { %568 = vmatpush.bf16.msrb.mxu1 %v1398_v59 }
 0x7f7   :  { %v421_v28 = vsub.f32 %v1234_v22, %v419_v26 }
 0x7f9   :  { %v424_v30 = vperm.slane %v421_v28, 1 }
 0x7fa   :  { %569 = vmatpush.bf16.msrb.mxu1 %v1397_v60 }
 0x7fb   :  { %v425_v31 = vadd.f32 %v424_v30, %v423_v29 }
 0x7fd   :  { %v426_v32 = vmax.f32 %v425_v31, 0.0 }
 0x7fe   :  { %570 = vmatpush.bf16.msrb.mxu1 %v1396_v61 }
 0x7ff   :  { %v427_v33 = vadd.f32 %v426_v32, %v329_v57 }
 0x801   :  { %v428_v34 = vpack.c.bf16 %v427_v33, %v427_v33 }
 0x803   :  { %1251 = vmatmul.msk.bf16.vlgmr.msrb.gmra.mxu0 %vm98_vm1, %v428_v34  ;;  %v1403_v34 = vld [vmem:[#allocation4 + $0xb8] sm:$0xff] }
 0x804   :  { %665 = vmatpush.bf16.msrb.mxu2 %v1403_v34 }
 0x880   :  { %v474_v35 = vpop.f32.mrf.mxu0 }
 0x881   :  { %v480_v36 = vmul.f32 %v474_v35, %v474_v35 }
 0x883   :  { %482 = vrot.lane.b32.xlu0 %v480_v36, %s1504_s29  ;;  %v1401_v36 = vld [vmem:[#allocation4 + $0xa8] sm:$0xff] }
 0x888   :  { %v476_v37 = vpop.f32.mrf.mxu0 }
 0x889   :  { %v1400_v37 = vld [vmem:[#allocation4 + $0xa0] sm:$0xff] }
 0x8f5   :  { %v483_v38 = vpop.permute.xlu0 %482 }
 0x8f6   :  { %v485_v39 = vsel %vm98_vm1, %v474_v35, %v483_v38  ;;  %v1270_v38 = vld [vmem:[%s1668_s4 + $0x8] sm:$0x3] }
 0x8f7   :  { %v486_v40 = vrot.slane %v485_v39, 4 }
 0x8f9   :  { %v487_v41 = vadd.f32 %v486_v40, %v485_v39 }
 0x8fb   :  { %v488_v42 = vrot.slane %v487_v41, 2 }
 0x8fd   :  { %v489_v43 = vadd.f32 %v488_v42, %v487_v41 }
 0x8ff   :  { %v490_v44 = vrot.slane %v489_v43, 1 }
 0x901   :  { %v491_v45 = vadd.f32 %v490_v44, %v489_v43 }
 0x903   :  { %v492_v46 = vmul.f32 0.125, %v491_v45 }
 0x905   :  { %v493_v47 = vmul.f32 %v492_v46, %v492_v46 }
 0x907   :  { %495 = vrot.lane.b32.xlu1 %v493_v47, %s1504_s29 }
 0x979   :  { %v496_v48 = vpop.permute.xlu1 %495 }
 0x97a   :  { %v498_v49 = vsub.f32 %v492_v46, %v496_v48 }
 0x97c   :  { %v499_v50 = vadd.f32 1e-05, %v498_v49 }
 0x97e   :  { %1437 = vrsqrt.f32 %v499_v50  ;;  %vm506_vm15 = vweird.f32 %v499_v50 }
 0x984   :  { %v1438_v51 = vpop.eup %1437 }
 0x985   :  { %v501_v52 = vmul.f32 %v1438_v51, %v499_v50  ;;  %vm507_vm14 = vweird.f32 %v1438_v51 }
 0x986   :  { %vm508_vm0 = vmor %vm506_vm15, %vm507_vm14 }
 0x987   :  { %v502_v53 = vmul.f32 %v1438_v51, %v501_v52 }
 0x989   :  { %v503_v54 = vmul.f32 0.5, %v502_v53 }
 0x98b   :  { %v504_v55 = vsub.f32 1.5, %v503_v54 }
 0x98d   :  { %v505_v56 = vmul.f32 %v1438_v51, %v504_v55 }
 0x98f   :  { %v509_v57 = vsel %vm508_vm0, %v1438_v51, %v505_v56 }
 0x990   :  { %511 = vrot.lane.b32.xlu2 %v509_v57, %s1504_s29 }
 0x9ea   :  { %v512_v63 = vpop.permute.xlu2 %511 }
 0x9eb   :  { %v514_v0 = vmul.f32 %v1252_v62, %v512_v63 }
 0x9ed   :  { %v515_v1 = vmul.f32 %v514_v0, %v492_v46  ;;  %v520_v3 = vperm.slane %v514_v0, 0 }
 0x9ef   :  { %v517_v2 = vrot.slane %v515_v1, 7  ;;  %v521_v5 = vmul.f32 %v520_v3, %v474_v35  ;;  %v1402_v35 = vld [vmem:[#allocation4 + $0xb0] sm:$0xff] }
 0x9f0   :  { %666 = vmatpush.bf16.msrb.mxu2 %v1402_v35 }
 0x9f1   :  { %v519_v4 = vsub.f32 %v1252_v62, %v517_v2 }
 0x9f3   :  { %v522_v6 = vperm.slane %v519_v4, 1 }
 0x9f4   :  { %667 = vmatpush.bf16.msrb.mxu2 %v1401_v36 }
 0x9f5   :  { %v523_v7 = vadd.f32 %v522_v6, %v521_v5 }
 0x9f7   :  { %v524_v8 = vmax.f32 %v523_v7, 0.0 }
 0x9f8   :  { %668 = vmatpush.bf16.msrb.mxu2 %v1400_v37 }
 0x9f9   :  { %v525_v9 = vadd.f32 %v524_v8, %v427_v33 }
 0x9fb   :  { %v526_v10 = vpack.c.bf16 %v525_v9, %v525_v9 }
 0x9fd   :  { %1269 = vmatmul.msk.bf16.vlgmr.msrb.gmra.mxu1 %vm98_vm1, %v526_v10  ;;  %v1407_v10 = vld [vmem:[#allocation4 + $0xd8] sm:$0xff] }
 0x9fe   :  { %763 = vmatpush.bf16.msrb.mxu3 %v1407_v10 }
 0xa7a   :  { %v572_v11 = vpop.f32.mrf.mxu1 }
 0xa7b   :  { %v578_v12 = vmul.f32 %v572_v11, %v572_v11 }
 0xa7d   :  { %580 = vrot.lane.b32.xlu0 %v578_v12, %s1504_s29  ;;  %v1405_v12 = vld [vmem:[#allocation4 + $0xc8] sm:$0xff] }
 0xa82   :  { %v574_v13 = vpop.f32.mrf.mxu1 }
 0xa83   :  { %v1404_v13 = vld [vmem:[#allocation4 + $0xc0] sm:$0xff] }
 0xaef   :  { %v581_v14 = vpop.permute.xlu0 %580 }
 0xaf0   :  { %v583_v15 = vsel %vm98_vm1, %v572_v11, %v581_v14  ;;  %v1288_v14 = vld [vmem:[%s1668_s4 + $0xa] sm:$0x3] }
 0xaf1   :  { %v584_v16 = vrot.slane %v583_v15, 4 }
 0xaf3   :  { %v585_v17 = vadd.f32 %v584_v16, %v583_v15 }
 0xaf5   :  { %v586_v18 = vrot.slane %v585_v17, 2 }
 0xaf7   :  { %v587_v19 = vadd.f32 %v586_v18, %v585_v17 }
 0xaf9   :  { %v588_v20 = vrot.slane %v587_v19, 1 }
 0xafb   :  { %v589_v21 = vadd.f32 %v588_v20, %v587_v19 }
 0xafd   :  { %v590_v22 = vmul.f32 0.125, %v589_v21 }
 0xaff   :  { %v591_v23 = vmul.f32 %v590_v22, %v590_v22 }
 0xb01   :  { %593 = vrot.lane.b32.xlu1 %v591_v23, %s1504_s29 }
 0xb73   :  { %v594_v24 = vpop.permute.xlu1 %593 }
 0xb74   :  { %v596_v25 = vsub.f32 %v590_v22, %v594_v24 }
 0xb76   :  { %v597_v26 = vadd.f32 1e-05, %v596_v25 }
 0xb78   :  { %1439 = vrsqrt.f32 %v597_v26  ;;  %vm604_vm3 = vweird.f32 %v597_v26 }
 0xb7e   :  { %v1440_v27 = vpop.eup %1439 }
 0xb7f   :  { %v599_v28 = vmul.f32 %v1440_v27, %v597_v26  ;;  %vm605_vm2 = vweird.f32 %v1440_v27 }
 0xb80   :  { %vm606_vm4 = vmor %vm604_vm3, %vm605_vm2 }
 0xb81   :  { %v600_v29 = vmul.f32 %v1440_v27, %v599_v28 }
 0xb83   :  { %v601_v30 = vmul.f32 0.5, %v600_v29 }
 0xb85   :  { %v602_v31 = vsub.f32 1.5, %v601_v30 }
 0xb87   :  { %v603_v32 = vmul.f32 %v1440_v27, %v602_v31 }
 0xb89   :  { %v607_v33 = vsel %vm606_vm4, %v1440_v27, %v603_v32 }
 0xb8a   :  { %609 = vrot.lane.b32.xlu2 %v607_v33, %s1504_s29 }
 0xbe4   :  { %v610_v39 = vpop.permute.xlu2 %609 }
 0xbe5   :  { %v612_v40 = vmul.f32 %v1270_v38, %v610_v39 }
 0xbe7   :  { %v613_v41 = vmul.f32 %v612_v40, %v590_v22  ;;  %v618_v43 = vperm.slane %v612_v40, 0 }
 0xbe9   :  { %v615_v42 = vrot.slane %v613_v41, 7  ;;  %v619_v45 = vmul.f32 %v618_v43, %v572_v11  ;;  %v1406_v11 = vld [vmem:[#allocation4 + $0xd0] sm:$0xff] }
 0xbea   :  { %764 = vmatpush.bf16.msrb.mxu3 %v1406_v11 }
 0xbeb   :  { %v617_v44 = vsub.f32 %v1270_v38, %v615_v42 }
 0xbed   :  { %v620_v46 = vperm.slane %v617_v44, 1 }
 0xbee   :  { %765 = vmatpush.bf16.msrb.mxu3 %v1405_v12 }
 0xbef   :  { %v621_v47 = vadd.f32 %v620_v46, %v619_v45 }
 0xbf1   :  { %v622_v48 = vmax.f32 %v621_v47, 0.0 }
 0xbf2   :  { %766 = vmatpush.bf16.msrb.mxu3 %v1404_v13 }
 0xbf3   :  { %v623_v49 = vadd.f32 %v622_v48, %v525_v9 }
 0xbf5   :  { %v624_v50 = vpack.c.bf16 %v623_v49, %v623_v49 }
 0xbf7   :  { %1287 = vmatmul.msk.bf16.vlgmr.msrb.gmra.mxu2 %vm98_vm1, %v624_v50  ;;  %v1411_v50 = vld [vmem:[#allocation4 + $0xf8] sm:$0xff] }
 0xbf8   :  { %861 = vmatpush.bf16.msra.mxu0 %v1411_v50 }
 0xc7a   :  { %v670_v51 = vpop.f32.mrf.mxu2 }
 0xc7b   :  { %v676_v52 = vmul.f32 %v670_v51, %v670_v51 }
 0xc7d   :  { %678 = vrot.lane.b32.xlu0 %v676_v52, %s1504_s29  ;;  %v1409_v52 = vld [vmem:[#allocation4 + $0xe8] sm:$0xff] }
 0xc82   :  { %v672_v53 = vpop.f32.mrf.mxu2 }
 0xc83   :  { %v1408_v53 = vld [vmem:[#allocation4 + $0xe0] sm:$0xff] }
 0xcef   :  { %v679_v54 = vpop.permute.xlu0 %678 }
 0xcf0   :  { %v681_v55 = vsel %vm98_vm1, %v670_v51, %v679_v54  ;;  %v1306_v54 = vld [vmem:[%s1668_s4 + $0xc] sm:$0x3] }
 0xcf1   :  { %v682_v56 = vrot.slane %v681_v55, 4 }
 0xcf3   :  { %v683_v57 = vadd.f32 %v682_v56, %v681_v55 }
 0xcf5   :  { %v684_v58 = vrot.slane %v683_v57, 2 }
 0xcf7   :  { %v685_v59 = vadd.f32 %v684_v58, %v683_v57 }
 0xcf9   :  { %v686_v60 = vrot.slane %v685_v59, 1 }
 0xcfb   :  { %v687_v61 = vadd.f32 %v686_v60, %v685_v59 }
 0xcfd   :  { %v688_v62 = vmul.f32 0.125, %v687_v61 }
 0xcff   :  { %v689_v63 = vmul.f32 %v688_v62, %v688_v62 }
 0xd01   :  { %691 = vrot.lane.b32.xlu1 %v689_v63, %s1504_s29 }
 0xd73   :  { %v692_v0 = vpop.permute.xlu1 %691 }
 0xd74   :  { %v694_v1 = vsub.f32 %v688_v62, %v692_v0 }
 0xd76   :  { %v695_v2 = vadd.f32 1e-05, %v694_v1 }
 0xd78   :  { %1441 = vrsqrt.f32 %v695_v2  ;;  %vm702_vm6 = vweird.f32 %v695_v2 }
 0xd7e   :  { %v1442_v3 = vpop.eup %1441 }
 0xd7f   :  { %v697_v4 = vmul.f32 %v1442_v3, %v695_v2  ;;  %vm703_vm5 = vweird.f32 %v1442_v3 }
 0xd80   :  { %vm704_vm7 = vmor %vm702_vm6, %vm703_vm5  ;;  %vm1165_vm5 = vcmask 15360  }
 0xd81   :  { %v698_v5 = vmul.f32 %v1442_v3, %v697_v4 }
 0xd83   :  { %v699_v6 = vmul.f32 0.5, %v698_v5 }
 0xd85   :  { %v700_v7 = vsub.f32 1.5, %v699_v6 }
 0xd87   :  { %v701_v8 = vmul.f32 %v1442_v3, %v700_v7 }
 0xd89   :  { %v705_v9 = vsel %vm704_vm7, %v1442_v3, %v701_v8 }
 0xd8a   :  { %707 = vrot.lane.b32.xlu2 %v705_v9, %s1504_s29 }
 0xde4   :  { %v708_v15 = vpop.permute.xlu2 %707 }
 0xde5   :  { %v710_v16 = vmul.f32 %v1288_v14, %v708_v15 }
 0xde7   :  { %v711_v17 = vmul.f32 %v710_v16, %v688_v62  ;;  %v716_v19 = vperm.slane %v710_v16, 0 }
 0xde9   :  { %v713_v18 = vrot.slane %v711_v17, 7  ;;  %v717_v21 = vmul.f32 %v716_v19, %v670_v51  ;;  %v1410_v51 = vld [vmem:[#allocation4 + $0xf0] sm:$0xff] }
 0xdea   :  { %862 = vmatpush.bf16.msra.mxu0 %v1410_v51 }
 0xdeb   :  { %v715_v20 = vsub.f32 %v1288_v14, %v713_v18 }
 0xded   :  { %v718_v22 = vperm.slane %v715_v20, 1 }
 0xdee   :  { %863 = vmatpush.bf16.msra.mxu0 %v1409_v52 }
 0xdef   :  { %v719_v23 = vadd.f32 %v718_v22, %v717_v21 }
 0xdf1   :  { %v720_v24 = vmax.f32 %v719_v23, 0.0 }
 0xdf2   :  { %864 = vmatpush.bf16.msra.mxu0 %v1408_v53 }
 0xdf3   :  { %v721_v25 = vadd.f32 %v720_v24, %v623_v49 }
 0xdf5   :  { %v722_v26 = vpack.c.bf16 %v721_v25, %v721_v25 }
 0xdf7   :  { %1305 = vmatmul.msk.bf16.vlgmr.msrb.gmra.mxu3 %vm98_vm1, %v722_v26  ;;  %v1415_v26 = vld [vmem:[#allocation4 + $0x118] sm:$0xff] }
 0xdf8   :  { %959 = vmatpush.bf16.msra.mxu1 %v1415_v26 }
 0xe7a   :  { %v768_v27 = vpop.f32.mrf.mxu3 }
 0xe7b   :  { %v774_v28 = vmul.f32 %v768_v27, %v768_v27 }
 0xe7d   :  { %776 = vrot.lane.b32.xlu0 %v774_v28, %s1504_s29  ;;  %v1413_v28 = vld [vmem:[#allocation4 + $0x108] sm:$0xff] }
 0xe82   :  { %v770_v29 = vpop.f32.mrf.mxu3 }
 0xe83   :  { %v1412_v29 = vld [vmem:[#allocation4 + $0x100] sm:$0xff] }
 0xeef   :  { %v777_v30 = vpop.permute.xlu0 %776 }
 0xef0   :  { %v779_v31 = vsel %vm98_vm1, %v768_v27, %v777_v30  ;;  %v1324_v30 = vld [vmem:[%s1668_s4 + $0xe] sm:$0x3] }
 0xef1   :  { %v780_v32 = vrot.slane %v779_v31, 4 }
 0xef3   :  { %v781_v33 = vadd.f32 %v780_v32, %v779_v31 }
 0xef5   :  { %v782_v34 = vrot.slane %v781_v33, 2 }
 0xef7   :  { %v783_v35 = vadd.f32 %v782_v34, %v781_v33 }
 0xef9   :  { %v784_v36 = vrot.slane %v783_v35, 1 }
 0xefb   :  { %v785_v37 = vadd.f32 %v784_v36, %v783_v35 }
 0xefd   :  { %v786_v38 = vmul.f32 0.125, %v785_v37 }
 0xeff   :  { %v787_v39 = vmul.f32 %v786_v38, %v786_v38 }
 0xf01   :  { %789 = vrot.lane.b32.xlu1 %v787_v39, %s1504_s29 }
 0xf73   :  { %v790_v40 = vpop.permute.xlu1 %789 }
 0xf74   :  { %v792_v41 = vsub.f32 %v786_v38, %v790_v40 }
 0xf76   :  { %v793_v42 = vadd.f32 1e-05, %v792_v41 }
 0xf78   :  { %1443 = vrsqrt.f32 %v793_v42  ;;  %vm800_vm9 = vweird.f32 %v793_v42 }
 0xf7e   :  { %v1444_v43 = vpop.eup %1443 }
 0xf7f   :  { %v795_v44 = vmul.f32 %v1444_v43, %v793_v42  ;;  %vm801_vm8 = vweird.f32 %v1444_v43 }
 0xf80   :  { %vm802_vm10 = vmor %vm800_vm9, %vm801_vm8 }
 0xf81   :  { %v796_v45 = vmul.f32 %v1444_v43, %v795_v44 }
 0xf83   :  { %v797_v46 = vmul.f32 0.5, %v796_v45 }
 0xf85   :  { %v798_v47 = vsub.f32 1.5, %v797_v46 }
 0xf87   :  { %v799_v48 = vmul.f32 %v1444_v43, %v798_v47 }
 0xf89   :  { %v803_v49 = vsel %vm802_vm10, %v1444_v43, %v799_v48 }
 0xf8a   :  { %805 = vrot.lane.b32.xlu2 %v803_v49, %s1504_s29 }
 0xfe4   :  { %v806_v55 = vpop.permute.xlu2 %805 }
 0xfe5   :  { %v808_v56 = vmul.f32 %v1306_v54, %v806_v55 }
 0xfe7   :  { %v809_v57 = vmul.f32 %v808_v56, %v786_v38  ;;  %v814_v59 = vperm.slane %v808_v56, 0 }
 0xfe9   :  { %v811_v58 = vrot.slane %v809_v57, 7  ;;  %v815_v61 = vmul.f32 %v814_v59, %v768_v27  ;;  %v1414_v27 = vld [vmem:[#allocation4 + $0x110] sm:$0xff] }
 0xfea   :  { %960 = vmatpush.bf16.msra.mxu1 %v1414_v27 }
 0xfeb   :  { %v813_v60 = vsub.f32 %v1306_v54, %v811_v58 }
 0xfed   :  { %v816_v62 = vperm.slane %v813_v60, 1 }
 0xfee   :  { %961 = vmatpush.bf16.msra.mxu1 %v1413_v28 }
 0xfef   :  { %v817_v63 = vadd.f32 %v816_v62, %v815_v61 }
 0xff1   :  { %v818_v0 = vmax.f32 %v817_v63, 0.0 }
 0xff2   :  { %962 = vmatpush.bf16.msra.mxu1 %v1412_v29 }
 0xff3   :  { %v819_v1 = vadd.f32 %v818_v0, %v721_v25 }
 0xff5   :  { %v820_v2 = vpack.c.bf16 %v819_v1, %v819_v1 }
 0xff7   :  { %1323 = vmatmul.msk.bf16.vlgmr.msra.gmra.mxu0 %vm98_vm1, %v820_v2  ;;  %v1419_v2 = vld [vmem:[#allocation4 + $0x138] sm:$0xff] }
 0xff8   :  { %1057 = vmatpush.bf16.msra.mxu2 %v1419_v2 }
0x1074   :  { %v866_v3 = vpop.f32.mrf.mxu0 }
0x1075   :  { %v872_v4 = vmul.f32 %v866_v3, %v866_v3 }
0x1077   :  { %874 = vrot.lane.b32.xlu0 %v872_v4, %s1504_s29  ;;  %v1417_v4 = vld [vmem:[#allocation4 + $0x128] sm:$0xff] }
0x107c   :  { %v868_v5 = vpop.f32.mrf.mxu0 }
0x107d   :  { %v1416_v5 = vld [vmem:[#allocation4 + $0x120] sm:$0xff] }
0x10e9   :  { %v875_v6 = vpop.permute.xlu0 %874 }
0x10ea   :  { %v877_v7 = vsel %vm98_vm1, %v866_v3, %v875_v6  ;;  %v1342_v6 = vld [vmem:[%s1668_s4 + $0x10] sm:$0x3] }
0x10eb   :  { %v878_v8 = vrot.slane %v877_v7, 4 }
0x10ed   :  { %v879_v9 = vadd.f32 %v878_v8, %v877_v7 }
0x10ef   :  { %v880_v10 = vrot.slane %v879_v9, 2 }
0x10f1   :  { %v881_v11 = vadd.f32 %v880_v10, %v879_v9 }
0x10f3   :  { %v882_v12 = vrot.slane %v881_v11, 1 }
0x10f5   :  { %v883_v13 = vadd.f32 %v882_v12, %v881_v11 }
0x10f7   :  { %v884_v14 = vmul.f32 0.125, %v883_v13 }
0x10f9   :  { %v885_v15 = vmul.f32 %v884_v14, %v884_v14 }
0x10fb   :  { %887 = vrot.lane.b32.xlu1 %v885_v15, %s1504_s29 }
0x116d   :  { %v888_v16 = vpop.permute.xlu1 %887 }
0x116e   :  { %v890_v17 = vsub.f32 %v884_v14, %v888_v16 }
0x1170   :  { %v891_v18 = vadd.f32 1e-05, %v890_v17 }
0x1172   :  { %1445 = vrsqrt.f32 %v891_v18  ;;  %vm898_vm12 = vweird.f32 %v891_v18 }
0x1178   :  { %v1446_v19 = vpop.eup %1445 }
0x1179   :  { %v893_v20 = vmul.f32 %v1446_v19, %v891_v18  ;;  %vm899_vm11 = vweird.f32 %v1446_v19 }
0x117a   :  { %vm900_vm13 = vmor %vm898_vm12, %vm899_vm11 }
0x117b   :  { %v894_v21 = vmul.f32 %v1446_v19, %v893_v20 }
0x117d   :  { %v895_v22 = vmul.f32 0.5, %v894_v21 }
0x117f   :  { %v896_v23 = vsub.f32 1.5, %v895_v22 }
0x1181   :  { %v897_v24 = vmul.f32 %v1446_v19, %v896_v23 }
0x1183   :  { %v901_v25 = vsel %vm900_vm13, %v1446_v19, %v897_v24 }
0x1184   :  { %903 = vrot.lane.b32.xlu2 %v901_v25, %s1504_s29 }
0x11de   :  { %v904_v31 = vpop.permute.xlu2 %903 }
0x11df   :  { %v906_v32 = vmul.f32 %v1324_v30, %v904_v31 }
0x11e1   :  { %v907_v33 = vmul.f32 %v906_v32, %v884_v14  ;;  %v912_v35 = vperm.slane %v906_v32, 0 }
0x11e3   :  { %v909_v34 = vrot.slane %v907_v33, 7  ;;  %v913_v37 = vmul.f32 %v912_v35, %v866_v3  ;;  %v1418_v3 = vld [vmem:[#allocation4 + $0x130] sm:$0xff] }
0x11e4   :  { %1058 = vmatpush.bf16.msra.mxu2 %v1418_v3 }
0x11e5   :  { %v911_v36 = vsub.f32 %v1324_v30, %v909_v34 }
0x11e7   :  { %v914_v38 = vperm.slane %v911_v36, 1 }
0x11e8   :  { %1059 = vmatpush.bf16.msra.mxu2 %v1417_v4 }
0x11e9   :  { %v915_v39 = vadd.f32 %v914_v38, %v913_v37 }
0x11eb   :  { %v916_v40 = vmax.f32 %v915_v39, 0.0 }
0x11ec   :  { %1060 = vmatpush.bf16.msra.mxu2 %v1416_v5 }
0x11ed   :  { %v917_v41 = vadd.f32 %v916_v40, %v819_v1 }
0x11ef   :  { %v918_v42 = vpack.c.bf16 %v917_v41, %v917_v41 }
0x11f1   :  { %1341 = vmatmul.msk.bf16.vlgmr.msra.gmra.mxu1 %vm98_vm1, %v918_v42  ;;  %v1423_v42 = vld [vmem:[%s1669_s5 + $0x18] sm:$0xff] }
0x11f2   :  { %1156 = vmatpush.bf16.msra.mxu3 %v1423_v42 }
0x126e   :  { %v964_v43 = vpop.f32.mrf.mxu1 }
0x126f   :  { %v970_v44 = vmul.f32 %v964_v43, %v964_v43 }
0x1271   :  { %972 = vrot.lane.b32.xlu0 %v970_v44, %s1504_s29  ;;  %v1421_v44 = vld [vmem:[%s1669_s5 + $0x8] sm:$0xff] }
0x1276   :  { %v966_v45 = vpop.f32.mrf.mxu1 }
0x1277   :  { %v1420_v45 = vld [vmem:[%s1669_s5] sm:$0xff] }
0x12e3   :  { %v973_v46 = vpop.permute.xlu0 %972 }
0x12e4   :  { %v975_v47 = vsel %vm98_vm1, %v964_v43, %v973_v46  ;;  %v1360_v46 = vld [vmem:[%s1668_s4 + $0x12] sm:$0x3] }
0x12e5   :  { %v976_v48 = vrot.slane %v975_v47, 4 }
0x12e7   :  { %v977_v49 = vadd.f32 %v976_v48, %v975_v47 }
0x12e9   :  { %v978_v50 = vrot.slane %v977_v49, 2 }
0x12eb   :  { %v979_v51 = vadd.f32 %v978_v50, %v977_v49 }
0x12ed   :  { %v980_v52 = vrot.slane %v979_v51, 1 }
0x12ef   :  { %v981_v53 = vadd.f32 %v980_v52, %v979_v51 }
0x12f1   :  { %v982_v54 = vmul.f32 0.125, %v981_v53 }
0x12f3   :  { %v983_v55 = vmul.f32 %v982_v54, %v982_v54 }
0x12f5   :  { %985 = vrot.lane.b32.xlu1 %v983_v55, %s1504_s29 }
0x1367   :  { %v986_v56 = vpop.permute.xlu1 %985 }
0x1368   :  { %v988_v57 = vsub.f32 %v982_v54, %v986_v56 }
0x136a   :  { %v989_v58 = vadd.f32 1e-05, %v988_v57 }
0x136c   :  { %1447 = vrsqrt.f32 %v989_v58  ;;  %vm996_vm15 = vweird.f32 %v989_v58 }
0x1372   :  { %v1448_v59 = vpop.eup %1447 }
0x1373   :  { %v991_v60 = vmul.f32 %v1448_v59, %v989_v58  ;;  %vm997_vm14 = vweird.f32 %v1448_v59 }
0x1374   :  { %vm998_vm0 = vmor %vm996_vm15, %vm997_vm14 }
0x1375   :  { %v992_v61 = vmul.f32 %v1448_v59, %v991_v60 }
0x1377   :  { %v993_v62 = vmul.f32 0.5, %v992_v61 }
0x1379   :  { %v994_v63 = vsub.f32 1.5, %v993_v62 }
0x137b   :  { %v995_v0 = vmul.f32 %v1448_v59, %v994_v63 }
0x137d   :  { %v999_v1 = vsel %vm998_vm0, %v1448_v59, %v995_v0  ;;  %v1428_v59 = vld [vmem:[%s1666_s2 + $0x2] ss:$0 sm:$0xff] }
0x137e   :  { %1001 = vrot.lane.b32.xlu2 %v999_v1, %s1504_s29 }
0x13d8   :  { %v1002_v7 = vpop.permute.xlu2 %1001 }
0x13d9   :  { %v1004_v8 = vmul.f32 %v1342_v6, %v1002_v7 }
0x13db   :  { %v1005_v9 = vmul.f32 %v1004_v8, %v982_v54  ;;  %v1010_v11 = vperm.slane %v1004_v8, 0 }
0x13dd   :  { %v1007_v10 = vrot.slane %v1005_v9, 7  ;;  %v1011_v13 = vmul.f32 %v1010_v11, %v964_v43  ;;  %v1422_v43 = vld [vmem:[%s1669_s5 + $0x10] sm:$0xff] }
0x13de   :  { %1157 = vmatpush.bf16.msra.mxu3 %v1422_v43 }
0x13df   :  { %v1009_v12 = vsub.f32 %v1342_v6, %v1007_v10 }
0x13e1   :  { %v1012_v14 = vperm.slane %v1009_v12, 1 }
0x13e2   :  { %1158 = vmatpush.bf16.msra.mxu3 %v1421_v44 }
0x13e3   :  { %v1013_v15 = vadd.f32 %v1012_v14, %v1011_v13 }
0x13e5   :  { %v1014_v16 = vmax.f32 %v1013_v15, 0.0 }
0x13e6   :  { %1159 = vmatpush.bf16.msra.mxu3 %v1420_v45 }
0x13e7   :  { %v1015_v17 = vadd.f32 %v1014_v16, %v917_v41 }
0x13e9   :  { %v1016_v18 = vpack.c.bf16 %v1015_v17, %v1015_v17 }
0x13eb   :  { %1359 = vmatmul.msk.bf16.vlgmr.msra.gmra.mxu2 %vm98_vm1, %v1016_v18 }
0x146e   :  { %v1062_v19 = vpop.f32.mrf.mxu2 }
0x146f   :  { %v1068_v20 = vmul.f32 %v1062_v19, %v1062_v19 }
0x1471   :  { %1070 = vrot.lane.b32.xlu0 %v1068_v20, %s1504_s29 }
0x1476   :  { %v1064_v21 = vpop.f32.mrf.mxu2 }
0x14e3   :  { %v1071_v22 = vpop.permute.xlu0 %1070 }
0x14e4   :  { %v1073_v23 = vsel %vm98_vm1, %v1062_v19, %v1071_v22 }
0x14e5   :  { %v1074_v24 = vrot.slane %v1073_v23, 4 }
0x14e7   :  { %v1075_v25 = vadd.f32 %v1074_v24, %v1073_v23 }
0x14e9   :  { %v1076_v26 = vrot.slane %v1075_v25, 2 }
0x14eb   :  { %v1077_v27 = vadd.f32 %v1076_v26, %v1075_v25 }
0x14ed   :  { %v1078_v28 = vrot.slane %v1077_v27, 1 }
0x14ef   :  { %v1079_v29 = vadd.f32 %v1078_v28, %v1077_v27 }
0x14f1   :  { %v1080_v30 = vmul.f32 0.125, %v1079_v29 }
0x14f3   :  { %v1081_v31 = vmul.f32 %v1080_v30, %v1080_v30 }
0x14f5   :  { %1083 = vrot.lane.b32.xlu1 %v1081_v31, %s1504_s29 }
0x1567   :  { %v1084_v32 = vpop.permute.xlu1 %1083 }
0x1568   :  { %v1086_v33 = vsub.f32 %v1080_v30, %v1084_v32 }
0x156a   :  { %v1087_v34 = vadd.f32 1e-05, %v1086_v33 }
0x156c   :  { %1449 = vrsqrt.f32 %v1087_v34  ;;  %vm1094_vm3 = vweird.f32 %v1087_v34 }
0x1572   :  { %v1450_v35 = vpop.eup %1449 }
0x1573   :  { %v1089_v36 = vmul.f32 %v1450_v35, %v1087_v34  ;;  %vm1095_vm2 = vweird.f32 %v1450_v35 }
0x1574   :  { %vm1096_vm4 = vmor %vm1094_vm3, %vm1095_vm2 }
0x1575   :  { %v1090_v37 = vmul.f32 %v1450_v35, %v1089_v36 }
0x1577   :  { %v1091_v38 = vmul.f32 0.5, %v1090_v37 }
0x1579   :  { %v1092_v39 = vsub.f32 1.5, %v1091_v38 }
0x157b   :  { %v1093_v40 = vmul.f32 %v1450_v35, %v1092_v39 }
0x157d   :  { %v1097_v41 = vsel %vm1096_vm4, %v1450_v35, %v1093_v40 }
0x157e   :  { %1099 = vrot.lane.b32.xlu2 %v1097_v41, %s1504_s29 }
0x15d8   :  { %v1100_v47 = vpop.permute.xlu2 %1099 }
0x15d9   :  { %v1102_v48 = vmul.f32 %v1360_v46, %v1100_v47 }
0x15db   :  { %v1103_v49 = vmul.f32 %v1102_v48, %v1080_v30  ;;  %v1108_v51 = vperm.slane %v1102_v48, 0 }
0x15dd   :  { %v1105_v50 = vrot.slane %v1103_v49, 7  ;;  %v1109_v53 = vmul.f32 %v1108_v51, %v1062_v19 }
0x15df   :  { %v1107_v52 = vsub.f32 %v1360_v46, %v1105_v50 }
0x15e1   :  { %v1110_v54 = vperm.slane %v1107_v52, 1 }
0x15e3   :  { %v1111_v55 = vadd.f32 %v1110_v54, %v1109_v53 }
0x15e5   :  { %v1112_v56 = vmax.f32 %v1111_v55, 0.0 }
0x15e7   :  { %v1113_v57 = vadd.f32 %v1112_v56, %v1015_v17 }
0x15e9   :  { %v1115_v58 = vpack.c.bf16 %v1113_v57, %v1113_v57 }
0x15eb   :  { %1377 = vmatmul.msk.bf16.vlgmr.msra.gmra.mxu3 %vm98_vm1, %v1115_v58 }
0x166e   :  { %v1161_v60 = vpop.f32.mrf.mxu3 }
0x166f   :  { %v1162_v61 = vadd.f32 %v1428_v59, %v1161_v60 }
0x1671   :  { %1166 = vst.msk [vmem:[%s1670_s6] sm:$0xff] %vm1165_vm5, %v1162_v61 }
0x1676   :  { %v1163_v62 = vpop.f32.mrf.mxu3 }
0x1677   :  { %1171 = vsyncpa [#allocation3], 1 }
0x1678   :  { %1172 = vsyncpa [#allocation5], 1 }

</bundles_post_ra>
